<compile_context>
chip_gen: v7x
topology: tpu7x:2x2x1
jax: 0.10.0
libtpu: 0.0.40
codegen_flags: <defaults>
</compile_context>

<pallas_src>
import math

import jax
import jax.numpy as jnp
from jax.experimental import pallas as pl
from jax.experimental.pallas import tpu as pltpu

# ---------------- small synthetic configuration ----------------
B = 2                       # batch
S = 8                       # caption token length
PREFIX_LEN = 4              # prefix_length (<= 10 -> MLP clip_project branch)
PREFIX_SIZE = 32            # CLIP feature size (512 in the real model)
E = 32                      # gpt_embedding_size (= wte.weight.shape[1])
V = 128                     # vocab size
T = PREFIX_LEN + S          # sequence length after concat
L = 2                       # transformer blocks (synthetic mini GPT-2)
H = 2                       # attention heads
DH = E // H                 # head dim
MLP_HID = E * PREFIX_LEN // 2   # clip_project hidden size
MLP_OUT = E * PREFIX_LEN        # clip_project output size
LN_EPS = 1e-5
NEG_INF = -1e30

# Row layout of the packed (N_VEC, E) small-parameter buffer.
ROW_WPE = 0                          # rows [0, T): positional embeddings
ROW_CLIP_B2 = T                      # rows [T, T+P): clip_project output bias per prefix slot
ROW_LAYER0 = T + PREFIX_LEN          # per-layer block of LAYER_ROWS rows starts here
LAYER_ROWS = 9                       # ln1_g, ln1_b, b_q, b_k, b_v, b_o, ln2_g, ln2_b, b_proj
ROW_LNF = ROW_LAYER0 + LAYER_ROWS * L
N_VEC = ROW_LNF + 2


def _layernorm(x, g, b):
    # Single pass: two independent lane reductions (sum, sum of squares).
    mu = jnp.mean(x, axis=-1, keepdims=True)
    ms = jnp.mean(x * x, axis=-1, keepdims=True)
    var = ms - mu * mu
    return (x - mu) * jax.lax.rsqrt(var + LN_EPS) * g + b


# ------------- fused kernel: clip_project + wte + concat + GPT-2 + LM head (per batch row) -------------
def clip_caption_kernel(tok_ref, prefix_ref, vec_ref, wte_ref, wte_t_ref,
                        clip_w1_ref, clip_b1_ref, clip_w2_ref,
                        w_qkvo_ref, w_fc_ref, b_fc_ref, w_proj_ref,
                        out_ref, h_ref):
    f32 = jnp.float32
    bf16 = jnp.bfloat16

    # --- clip_project = MLP(Linear -> Tanh -> Linear), prefix rows stored straight into h_ref ---
    x = prefix_ref[0].astype(bf16)                                          # (1, PREFIX_SIZE)
    h1 = jnp.tanh(jnp.dot(x, clip_w1_ref[...], preferred_element_type=f32)
                  + clip_b1_ref[...])                                       # (1, MLP_HID) f32
    h1b = h1.astype(bf16)
    for p in range(PREFIX_LEN):
        row = jnp.dot(h1b, clip_w2_ref[p], preferred_element_type=f32)      # (1, E)
        h_ref[p:p + 1, :] = (row
                             + vec_ref[ROW_CLIP_B2 + p:ROW_CLIP_B2 + p + 1, :]
                             + vec_ref[ROW_WPE + p:ROW_WPE + p + 1, :])     # + wpe folded in

    # --- gpt.transformer.wte(tokens): one-hot @ wte on the MXU; wpe folded into the store ---
    # TODO(synk): out-of-range token ids silently map to a zero row (torch would raise);
    # for the real GPT-2 vocab (V=50257) gather wte rows via scalar-prefetched tokens and
    # V-tile the tied LM head with wte kept in HBM (memory_space=pl.ANY) instead.
    tok = tok_ref[0]                                                        # (S, 1) int32
    iota_v = jax.lax.broadcasted_iota(jnp.int32, (S, V), 1)
    onehot = (iota_v == tok).astype(bf16)                                   # (S, V)
    tok_emb = jnp.dot(onehot, wte_ref[...], preferred_element_type=f32)     # (S, E)
    h_ref[PREFIX_LEN:T, :] = tok_emb + vec_ref[PREFIX_LEN:T, :]

    h = h_ref[...]                                                          # (T, E) f32

    # --- hoisted loop-invariant constants ---
    q_pos = jax.lax.broadcasted_iota(jnp.int32, (T, T), 0)
    k_pos = jax.lax.broadcasted_iota(jnp.int32, (T, T), 1)
    causal = k_pos <= q_pos
    col = jax.lax.broadcasted_iota(jnp.int32, (1, E), 1)
    scale = 1.0 / math.sqrt(DH)
    head_mask = [((col >= hh * DH) & (col < (hh + 1) * DH)).astype(f32) for hh in range(H)]
    head_mask_q = [m * scale for m in head_mask]                            # fold 1/sqrt(DH)

    # --- L transformer blocks on flat (T, E) rows ---
    for l in range(L):
        base = ROW_LAYER0 + LAYER_ROWS * l
        ln1_g = vec_ref[base + 0:base + 1, :]
        ln1_b = vec_ref[base + 1:base + 2, :]
        b_q = vec_ref[base + 2:base + 3, :]
        b_k = vec_ref[base + 3:base + 4, :]
        b_v = vec_ref[base + 4:base + 5, :]
        b_o = vec_ref[base + 5:base + 6, :]
        ln2_g = vec_ref[base + 6:base + 7, :]
        ln2_b = vec_ref[base + 7:base + 8, :]
        b_pr = vec_ref[base + 8:base + 9, :]

        # causal multi-head self-attention; heads selected via constant masks (no relayout)
        hn = _layernorm(h, ln1_g, ln1_b).astype(bf16)
        q = jnp.dot(hn, w_qkvo_ref[4 * l + 0], preferred_element_type=f32) + b_q   # (T, E)
        k = jnp.dot(hn, w_qkvo_ref[4 * l + 1], preferred_element_type=f32) + b_k
        v = jnp.dot(hn, w_qkvo_ref[4 * l + 2], preferred_element_type=f32) + b_v
        kb = k.astype(bf16)
        attn = None
        for hh in range(H):
            qh = (q * head_mask_q[hh]).astype(bf16)
            s = jax.lax.dot_general(qh, kb, (((1,), (1,)), ((), ())),
                                    preferred_element_type=f32)             # (T, T)
            s = jnp.where(causal, s, NEG_INF)
            s = s - jnp.max(s, axis=-1, keepdims=True)
            ps = jnp.exp(s)
            # approx reciprocal (EUP); ~2^-12 rel error vs exact divide.
            ps = ps * pl.reciprocal(jnp.sum(ps, axis=-1, keepdims=True), approx=True)
            vh = (v * head_mask[hh]).astype(bf16)                           # head cols only
            o_h = jnp.dot(ps.astype(bf16), vh, preferred_element_type=f32)  # (T, E)
            attn = o_h if attn is None else attn + o_h
        h = h + jnp.dot(attn.astype(bf16), w_qkvo_ref[4 * l + 3],
                        preferred_element_type=f32) + b_o

        # MLP block (gelu_new tanh approximation, as GPT-2)
        hn = _layernorm(h, ln2_g, ln2_b).astype(bf16)
        ff = jnp.dot(hn, w_fc_ref[l], preferred_element_type=f32) + b_fc_ref[l]
        ff = jax.nn.gelu(ff, approximate=True)
        h = h + jnp.dot(ff.astype(bf16), w_proj_ref[l], preferred_element_type=f32) + b_pr

    # --- final LN + tied LM head with pre-transposed wte_T -> lane-dense (T, V=128) store ---
    h = _layernorm(h, vec_ref[ROW_LNF:ROW_LNF + 1, :], vec_ref[ROW_LNF + 1:ROW_LNF + 2, :])
    out_ref[0] = jnp.dot(h.astype(bf16), wte_t_ref[...], preferred_element_type=f32)


# ---------------- ClipCaptionModel.forward ----------------
def clip_caption_forward(tokens, prefix, prep, mask=None, labels=None):
    # TODO(synk): labels path (dummy_token concat + shifted cross-entropy inside
    # GPT2LMHeadModel) and attention_mask are not implemented; this runs the
    # labels=None, mask=None branch and returns LM logits (B, prefix_length+S, V).
    tokens3 = tokens.reshape(B, S, 1).astype(jnp.int32)
    prefix3 = prefix.reshape(B, 1, PREFIX_SIZE).astype(jnp.float32)

    def _resident(arr):
        nd = arr.ndim
        return pl.BlockSpec(arr.shape, lambda b, _nd=nd: (0,) * _nd)

    weights = (prep["vec_pack"], prep["wte"], prep["wte_t"],
               prep["clip_w1"], prep["clip_b1"], prep["clip_w2"],
               prep["w_qkvo"], prep["w_fc"], prep["b_fc"], prep["w_proj"])

    in_specs = ([pl.BlockSpec((1, S, 1), lambda b: (b, 0, 0)),
                 pl.BlockSpec((1, 1, PREFIX_SIZE), lambda b: (b, 0, 0))]
                + [_resident(w) for w in weights])

    logits = pl.pallas_call(
        clip_caption_kernel,
        out_shape=jax.ShapeDtypeStruct((B, T, V), jnp.float32),
        grid=(B,),
        in_specs=in_specs,
        out_specs=pl.BlockSpec((1, T, V), lambda b: (b, 0, 0)),
        scratch_shapes=[pltpu.VMEM((T, E), jnp.float32)],
        compiler_params=pltpu.CompilerParams(dimension_semantics=("parallel",)),
    )(tokens3, prefix3, *weights)
    return logits


# ---------------- deterministic parameter init (PyTorch-like layout) ----------------
def init_params(key):
    keys = jax.random.split(key, 8)

    def nrm(k, shape, scale=0.02):
        return (scale * jax.random.normal(k, shape)).astype(jnp.float32)

    return dict(
        wte=nrm(keys[0], (V, E)),
        wpe=nrm(keys[1], (T, E)),
        clip_w1=nrm(keys[2], (PREFIX_SIZE, MLP_HID)),
        clip_b1=jnp.zeros((1, MLP_HID), jnp.float32),
        clip_w2=nrm(keys[3], (MLP_HID, MLP_OUT)),
        clip_b2=jnp.zeros((1, MLP_OUT), jnp.float32),
        ln1_g=jnp.ones((L, 1, E), jnp.float32),
        ln1_b=jnp.zeros((L, 1, E), jnp.float32),
        w_qkv=nrm(keys[4], (L, E, 3 * E)),
        b_qkv=jnp.zeros((L, 1, 3 * E), jnp.float32),
        w_attn_o=nrm(keys[5], (L, E, E)),
        b_attn_o=jnp.zeros((L, 1, E), jnp.float32),
        ln2_g=jnp.ones((L, 1, E), jnp.float32),
        ln2_b=jnp.zeros((L, 1, E), jnp.float32),
        w_fc=nrm(keys[6], (L, E, 4 * E)),
        b_fc=jnp.zeros((L, 1, 4 * E), jnp.float32),
        w_proj=nrm(keys[7], (L, 4 * E, E)),
        b_proj=jnp.zeros((L, 1, E), jnp.float32),
        lnf_g=jnp.ones((1, E), jnp.float32),
        lnf_b=jnp.zeros((1, E), jnp.float32),
    )


# ---------------- wrapper-side (trace-time / free) repacking of parameters ----------------
def prepare_params(p):
    # split QKV weight + stack with Wo: (L*4, E, E), index 4*l + {q,k,v,o}
    wq = p["w_qkv"][:, :, 0:E]
    wk = p["w_qkv"][:, :, E:2 * E]
    wv = p["w_qkv"][:, :, 2 * E:3 * E]
    w_qkvo = jnp.stack([wq, wk, wv, p["w_attn_o"]], axis=1).reshape(L * 4, E, E)

    bq = p["b_qkv"][:, 0, 0:E]
    bk = p["b_qkv"][:, 0, E:2 * E]
    bv = p["b_qkv"][:, 0, 2 * E:3 * E]

    # pack every E-wide small vector (wpe, biases, LN params) into one f32 buffer
    rows = [p["wpe"], p["clip_b2"].reshape(PREFIX_LEN, E)]
    for l in range(L):
        rows.append(jnp.stack([
            p["ln1_g"][l, 0], p["ln1_b"][l, 0],
            bq[l], bk[l], bv[l],
            p["b_attn_o"][l, 0],
            p["ln2_g"][l, 0], p["ln2_b"][l, 0],
            p["b_proj"][l, 0],
        ], axis=0))
    rows.append(p["lnf_g"])
    rows.append(p["lnf_b"])
    vec_pack = jnp.concatenate(rows, axis=0).astype(jnp.float32)
    assert vec_pack.shape == (N_VEC, E)

    return dict(
        vec_pack=vec_pack,
        wte=p["wte"].astype(jnp.bfloat16),                                   # (V, E)
        wte_t=p["wte"].T.astype(jnp.bfloat16),                               # (E, V) pre-transposed
        clip_w1=p["clip_w1"].astype(jnp.bfloat16),                           # (PREFIX_SIZE, MLP_HID)
        clip_b1=p["clip_b1"].astype(jnp.float32),                            # (1, MLP_HID)
        clip_w2=p["clip_w2"].reshape(MLP_HID, PREFIX_LEN, E)
                            .transpose(1, 0, 2).astype(jnp.bfloat16),        # (P, MLP_HID, E)
        w_qkvo=w_qkvo.astype(jnp.bfloat16),                                  # (L*4, E, E)
        w_fc=p["w_fc"].astype(jnp.bfloat16),                                 # (L, E, 4E)
        b_fc=p["b_fc"].astype(jnp.float32),                                  # (L, 1, 4E)
        w_proj=p["w_proj"].astype(jnp.bfloat16),                             # (L, 4E, E)
    )


if __name__ == "__main__":
    key = jax.random.PRNGKey(0)
    k_tok, k_pref, k_par = jax.random.split(key, 3)
    tokens = jax.random.randint(k_tok, (B, S), 0, V, dtype=jnp.int32)
    prefix = jax.random.normal(k_pref, (B, PREFIX_SIZE), dtype=jnp.float32)
    prep = prepare_params(init_params(k_par))

    fwd = jax.jit(clip_caption_forward)
    logits = fwd(tokens, prefix, prep)
    jax.block_until_ready(logits)
    assert logits.shape == (B, T, V) and logits.dtype == jnp.float32
    print("KERNEL_OK")
</pallas_src>

<mosaic_0001>
module attributes {stable_mosaic.version = 11 : i64} {
  func.func @clip_caption_kernel(%arg0: i32, %arg1: memref<1x8x1xi32, #tpu.memory_space<vmem>>, %arg2: memref<1x1x32xf32, #tpu.memory_space<vmem>>, %arg3: memref<36x32xf32, #tpu.memory_space<vmem>>, %arg4: memref<128x32xbf16, #tpu.memory_space<vmem>>, %arg5: memref<32x128xbf16, #tpu.memory_space<vmem>>, %arg6: memref<32x64xbf16, #tpu.memory_space<vmem>>, %arg7: memref<1x64xf32, #tpu.memory_space<vmem>>, %arg8: memref<4x64x32xbf16, #tpu.memory_space<vmem>>, %arg9: memref<8x32x32xbf16, #tpu.memory_space<vmem>>, %arg10: memref<2x32x128xbf16, #tpu.memory_space<vmem>>, %arg11: memref<2x1x128xf32, #tpu.memory_space<vmem>>, %arg12: memref<2x128x32xbf16, #tpu.memory_space<vmem>>, %arg13: memref<1x12x128xf32, #tpu.memory_space<vmem>>, %arg14: memref<12x32xf32, #tpu.memory_space<vmem>>) attributes {dimension_semantics = [#tpu.dimension_semantics<parallel>], iteration_bounds = array<i64: 2>, scalar_prefetch = 0 : i64, scratch_operands = 1 : i64, tpu.core_type = #tpu.core_type<tc>, window_params = [{transform_indices = @transform_0, window_bounds = array<i64: 1, 8, 1>}, {transform_indices = @transform_1, window_bounds = array<i64: 1, 1, 32>}, {pipeline_mode = #tpu.pipeline_mode<synchronous>, transform_indices = @transform_2, window_bounds = array<i64: 36, 32>}, {pipeline_mode = #tpu.pipeline_mode<synchronous>, transform_indices = @transform_3, window_bounds = array<i64: 128, 32>}, {pipeline_mode = #tpu.pipeline_mode<synchronous>, transform_indices = @transform_4, window_bounds = array<i64: 32, 128>}, {pipeline_mode = #tpu.pipeline_mode<synchronous>, transform_indices = @transform_5, window_bounds = array<i64: 32, 64>}, {pipeline_mode = #tpu.pipeline_mode<synchronous>, transform_indices = @transform_6, window_bounds = array<i64: 1, 64>}, {pipeline_mode = #tpu.pipeline_mode<synchronous>, transform_indices = @transform_7, window_bounds = array<i64: 4, 64, 32>}, {pipeline_mode = #tpu.pipeline_mode<synchronous>, transform_indices = @transform_8, window_bounds = array<i64: 8, 32, 32>}, {pipeline_mode = #tpu.pipeline_mode<synchronous>, transform_indices = @transform_9, window_bounds = array<i64: 2, 32, 128>}, {pipeline_mode = #tpu.pipeline_mode<synchronous>, transform_indices = @transform_10, window_bounds = array<i64: 2, 1, 128>}, {pipeline_mode = #tpu.pipeline_mode<synchronous>, transform_indices = @transform_11, window_bounds = array<i64: 2, 128, 32>}, {transform_indices = @transform_12, window_bounds = array<i64: 1, 12, 128>}]} {
    %c0 = arith.constant 0 : index
    %c0_0 = arith.constant 0 : index
    %c0_1 = arith.constant 0 : index
    %0 = vector.load %arg2[%c0, %c0_0, %c0_1] : memref<1x1x32xf32, #tpu.memory_space<vmem>>, vector<1x1x32xf32>
    %1 = vector.shape_cast %0 : vector<1x1x32xf32> to vector<1x32xf32>
    %2 = arith.truncf %1 : vector<1x32xf32> to vector<1x32xbf16>
    %c0_2 = arith.constant 0 : index
    %c0_3 = arith.constant 0 : index
    %3 = vector.load %arg6[%c0_2, %c0_3] : memref<32x64xbf16, #tpu.memory_space<vmem>>, vector<32x64xbf16>
    %cst = arith.constant dense<0.000000e+00> : vector<1x64xf32>
    %4 = tpu.matmul %2, %3, %cst {dimension_numbers = #tpu.dot_dimension_numbers<[1], [0], [0], [1], [0, 0, 1, 1], [], []>} : vector<1x32xbf16>, vector<32x64xbf16>, vector<1x64xf32> -> vector<1x64xf32>
    %c0_4 = arith.constant 0 : index
    %c0_5 = arith.constant 0 : index
    %5 = vector.load %arg7[%c0_4, %c0_5] : memref<1x64xf32, #tpu.memory_space<vmem>>, vector<1x64xf32>
    %6 = arith.addf %4, %5 : vector<1x64xf32>
    %7 = math.tanh %6 : vector<1x64xf32>
    %8 = arith.truncf %7 : vector<1x64xf32> to vector<1x64xbf16>
    %c0_6 = arith.constant 0 : index
    %c0_7 = arith.constant 0 : index
    %c0_8 = arith.constant 0 : index
    %9 = vector.load %arg8[%c0_6, %c0_7, %c0_8] : memref<4x64x32xbf16, #tpu.memory_space<vmem>>, vector<1x64x32xbf16>
    %10 = vector.shape_cast %9 : vector<1x64x32xbf16> to vector<64x32xbf16>
    %cst_9 = arith.constant dense<0.000000e+00> : vector<1x32xf32>
    %11 = tpu.matmul %8, %10, %cst_9 {dimension_numbers = #tpu.dot_dimension_numbers<[1], [0], [0], [1], [0, 0, 1, 1], [], []>} : vector<1x64xbf16>, vector<64x32xbf16>, vector<1x32xf32> -> vector<1x32xf32>
    %c12 = arith.constant 12 : index
    %c0_10 = arith.constant 0 : index
    %12 = vector.load %arg3[%c12, %c0_10] : memref<36x32xf32, #tpu.memory_space<vmem>>, vector<1x32xf32>
    %13 = arith.addf %11, %12 : vector<1x32xf32>
    %c0_11 = arith.constant 0 : index
    %c0_12 = arith.constant 0 : index
    %14 = vector.load %arg3[%c0_11, %c0_12] : memref<36x32xf32, #tpu.memory_space<vmem>>, vector<1x32xf32>
    %15 = arith.addf %13, %14 : vector<1x32xf32>
    %c0_13 = arith.constant 0 : index
    %c0_14 = arith.constant 0 : index
    %16 = vector.load %arg14[%c0_13, %c0_14] : memref<12x32xf32, #tpu.memory_space<vmem>>, vector<1x32xf32>
    tpu.vector_store %arg14[%c0_13, %c0_14], %15 {strides = array<i32>} : memref<12x32xf32, #tpu.memory_space<vmem>>, vector<1x32xf32>,
    %c1 = arith.constant 1 : index
    %c0_15 = arith.constant 0 : index
    %c0_16 = arith.constant 0 : index
    %17 = vector.load %arg8[%c1, %c0_15, %c0_16] : memref<4x64x32xbf16, #tpu.memory_space<vmem>>, vector<1x64x32xbf16>
    %18 = vector.shape_cast %17 : vector<1x64x32xbf16> to vector<64x32xbf16>
    %cst_17 = arith.constant dense<0.000000e+00> : vector<1x32xf32>
    %19 = tpu.matmul %8, %18, %cst_17 {dimension_numbers = #tpu.dot_dimension_numbers<[1], [0], [0], [1], [0, 0, 1, 1], [], []>} : vector<1x64xbf16>, vector<64x32xbf16>, vector<1x32xf32> -> vector<1x32xf32>
    %c13 = arith.constant 13 : index
    %c0_18 = arith.constant 0 : index
    %20 = vector.load %arg3[%c13, %c0_18] : memref<36x32xf32, #tpu.memory_space<vmem>>, vector<1x32xf32>
    %21 = arith.addf %19, %20 : vector<1x32xf32>
    %c1_19 = arith.constant 1 : index
    %c0_20 = arith.constant 0 : index
    %22 = vector.load %arg3[%c1_19, %c0_20] : memref<36x32xf32, #tpu.memory_space<vmem>>, vector<1x32xf32>
    %23 = arith.addf %21, %22 : vector<1x32xf32>
    %c1_21 = arith.constant 1 : index
    %c0_22 = arith.constant 0 : index
    %24 = vector.load %arg14[%c1_21, %c0_22] : memref<12x32xf32, #tpu.memory_space<vmem>>, vector<1x32xf32>
    tpu.vector_store %arg14[%c1_21, %c0_22], %23 {strides = array<i32>} : memref<12x32xf32, #tpu.memory_space<vmem>>, vector<1x32xf32>,
    %c2 = arith.constant 2 : index
    %c0_23 = arith.constant 0 : index
    %c0_24 = arith.constant 0 : index
    %25 = vector.load %arg8[%c2, %c0_23, %c0_24] : memref<4x64x32xbf16, #tpu.memory_space<vmem>>, vector<1x64x32xbf16>
    %26 = vector.shape_cast %25 : vector<1x64x32xbf16> to vector<64x32xbf16>
    %cst_25 = arith.constant dense<0.000000e+00> : vector<1x32xf32>
    %27 = tpu.matmul %8, %26, %cst_25 {dimension_numbers = #tpu.dot_dimension_numbers<[1], [0], [0], [1], [0, 0, 1, 1], [], []>} : vector<1x64xbf16>, vector<64x32xbf16>, vector<1x32xf32> -> vector<1x32xf32>
    %c14 = arith.constant 14 : index
    %c0_26 = arith.constant 0 : index
    %28 = vector.load %arg3[%c14, %c0_26] : memref<36x32xf32, #tpu.memory_space<vmem>>, vector<1x32xf32>
    %29 = arith.addf %27, %28 : vector<1x32xf32>
    %c2_27 = arith.constant 2 : index
    %c0_28 = arith.constant 0 : index
    %30 = vector.load %arg3[%c2_27, %c0_28] : memref<36x32xf32, #tpu.memory_space<vmem>>, vector<1x32xf32>
    %31 = arith.addf %29, %30 : vector<1x32xf32>
    %c2_29 = arith.constant 2 : index
    %c0_30 = arith.constant 0 : index
    %32 = vector.load %arg14[%c2_29, %c0_30] : memref<12x32xf32, #tpu.memory_space<vmem>>, vector<1x32xf32>
    tpu.vector_store %arg14[%c2_29, %c0_30], %31 {strides = array<i32>} : memref<12x32xf32, #tpu.memory_space<vmem>>, vector<1x32xf32>,
    %c3 = arith.constant 3 : index
    %c0_31 = arith.constant 0 : index
    %c0_32 = arith.constant 0 : index
    %33 = vector.load %arg8[%c3, %c0_31, %c0_32] : memref<4x64x32xbf16, #tpu.memory_space<vmem>>, vector<1x64x32xbf16>
    %34 = vector.shape_cast %33 : vector<1x64x32xbf16> to vector<64x32xbf16>
    %cst_33 = arith.constant dense<0.000000e+00> : vector<1x32xf32>
    %35 = tpu.matmul %8, %34, %cst_33 {dimension_numbers = #tpu.dot_dimension_numbers<[1], [0], [0], [1], [0, 0, 1, 1], [], []>} : vector<1x64xbf16>, vector<64x32xbf16>, vector<1x32xf32> -> vector<1x32xf32>
    %c15 = arith.constant 15 : index
    %c0_34 = arith.constant 0 : index
    %36 = vector.load %arg3[%c15, %c0_34] : memref<36x32xf32, #tpu.memory_space<vmem>>, vector<1x32xf32>
    %37 = arith.addf %35, %36 : vector<1x32xf32>
    %c3_35 = arith.constant 3 : index
    %c0_36 = arith.constant 0 : index
    %38 = vector.load %arg3[%c3_35, %c0_36] : memref<36x32xf32, #tpu.memory_space<vmem>>, vector<1x32xf32>
    %39 = arith.addf %37, %38 : vector<1x32xf32>
    %c3_37 = arith.constant 3 : index
    %c0_38 = arith.constant 0 : index
    %40 = vector.load %arg14[%c3_37, %c0_38] : memref<12x32xf32, #tpu.memory_space<vmem>>, vector<1x32xf32>
    tpu.vector_store %arg14[%c3_37, %c0_38], %39 {strides = array<i32>} : memref<12x32xf32, #tpu.memory_space<vmem>>, vector<1x32xf32>,
    %c0_39 = arith.constant 0 : index
    %c0_40 = arith.constant 0 : index
    %c0_41 = arith.constant 0 : index
    %41 = vector.load %arg1[%c0_39, %c0_40, %c0_41] : memref<1x8x1xi32, #tpu.memory_space<vmem>>, vector<1x8x1xi32>
    %42 = vector.shape_cast %41 : vector<1x8x1xi32> to vector<8x1xi32>
    %43 = tpu.iota {dimensions = array<i32: 1>} : vector<8x128xi32>
    %44 = vector.broadcast %42 : vector<8x1xi32> to vector<8x128xi32>
    %45 = arith.cmpi eq, %43, %44 : vector<8x128xi32>
    %46 = arith.extui %45 : vector<8x128xi1> to vector<8x128xi32>
    %47 = arith.sitofp %46 : vector<8x128xi32> to vector<8x128xf32>
    %48 = arith.truncf %47 : vector<8x128xf32> to vector<8x128xbf16>
    %c0_42 = arith.constant 0 : index
    %c0_43 = arith.constant 0 : index
    %49 = vector.load %arg4[%c0_42, %c0_43] : memref<128x32xbf16, #tpu.memory_space<vmem>>, vector<128x32xbf16>
    %cst_44 = arith.constant dense<0.000000e+00> : vector<8x32xf32>
    %50 = tpu.matmul %48, %49, %cst_44 {dimension_numbers = #tpu.dot_dimension_numbers<[1], [0], [0], [1], [0, 0, 1, 1], [], []>} : vector<8x128xbf16>, vector<128x32xbf16>, vector<8x32xf32> -> vector<8x32xf32>
    %c4 = arith.constant 4 : index
    %c0_45 = arith.constant 0 : index
    %51 = vector.load %arg3[%c4, %c0_45] : memref<36x32xf32, #tpu.memory_space<vmem>>, vector<8x32xf32>
    %52 = arith.addf %50, %51 : vector<8x32xf32>
    %c4_46 = arith.constant 4 : index
    %c0_47 = arith.constant 0 : index
    %53 = vector.load %arg14[%c4_46, %c0_47] : memref<12x32xf32, #tpu.memory_space<vmem>>, vector<8x32xf32>
    tpu.vector_store %arg14[%c4_46, %c0_47], %52 {strides = array<i32>} : memref<12x32xf32, #tpu.memory_space<vmem>>, vector<8x32xf32>,
    %c0_48 = arith.constant 0 : index
    %c0_49 = arith.constant 0 : index
    %54 = vector.load %arg14[%c0_48, %c0_49] : memref<12x32xf32, #tpu.memory_space<vmem>>, vector<12x32xf32>
    %55 = tpu.iota {dimensions = array<i32: 0>} : vector<12x12xi32>
    %56 = tpu.iota {dimensions = array<i32: 1>} : vector<12x12xi32>
    %57 = arith.cmpi sle, %56, %55 : vector<12x12xi32>
    %58 = tpu.iota {dimensions = array<i32: 1>} : vector<1x32xi32>
    %c0_i32 = arith.constant 0 : i32
    %59 = vector.broadcast %c0_i32 : i32 to vector<1x32xi32>
    %60 = arith.cmpi sge, %58, %59 : vector<1x32xi32>
    %c16_i32 = arith.constant 16 : i32
    %61 = vector.broadcast %c16_i32 : i32 to vector<1x32xi32>
    %62 = arith.cmpi slt, %58, %61 : vector<1x32xi32>
    %63 = arith.andi %60, %62 : vector<1x32xi1>
    %64 = arith.extui %63 : vector<1x32xi1> to vector<1x32xi32>
    %65 = arith.sitofp %64 : vector<1x32xi32> to vector<1x32xf32>
    %c16_i32_50 = arith.constant 16 : i32
    %66 = vector.broadcast %c16_i32_50 : i32 to vector<1x32xi32>
    %67 = arith.cmpi sge, %58, %66 : vector<1x32xi32>
    %c32_i32 = arith.constant 32 : i32
    %68 = vector.broadcast %c32_i32 : i32 to vector<1x32xi32>
    %69 = arith.cmpi slt, %58, %68 : vector<1x32xi32>
    %70 = arith.andi %67, %69 : vector<1x32xi1>
    %71 = arith.extui %70 : vector<1x32xi1> to vector<1x32xi32>
    %72 = arith.sitofp %71 : vector<1x32xi32> to vector<1x32xf32>
    %cst_51 = arith.constant 2.500000e-01 : f32
    %73 = vector.broadcast %cst_51 : f32 to vector<1x32xf32>
    %74 = arith.mulf %65, %73 : vector<1x32xf32>
    %cst_52 = arith.constant 2.500000e-01 : f32
    %75 = vector.broadcast %cst_52 : f32 to vector<1x32xf32>
    %76 = arith.mulf %72, %75 : vector<1x32xf32>
    %c16 = arith.constant 16 : index
    %c0_53 = arith.constant 0 : index
    %77 = vector.load %arg3[%c16, %c0_53] : memref<36x32xf32, #tpu.memory_space<vmem>>, vector<1x32xf32>
    %c17 = arith.constant 17 : index
    %c0_54 = arith.constant 0 : index
    %78 = vector.load %arg3[%c17, %c0_54] : memref<36x32xf32, #tpu.memory_space<vmem>>, vector<1x32xf32>
    %c18 = arith.constant 18 : index
    %c0_55 = arith.constant 0 : index
    %79 = vector.load %arg3[%c18, %c0_55] : memref<36x32xf32, #tpu.memory_space<vmem>>, vector<1x32xf32>
    %c19 = arith.constant 19 : index
    %c0_56 = arith.constant 0 : index
    %80 = vector.load %arg3[%c19, %c0_56] : memref<36x32xf32, #tpu.memory_space<vmem>>, vector<1x32xf32>
    %c20 = arith.constant 20 : index
    %c0_57 = arith.constant 0 : index
    %81 = vector.load %arg3[%c20, %c0_57] : memref<36x32xf32, #tpu.memory_space<vmem>>, vector<1x32xf32>
    %c21 = arith.constant 21 : index
    %c0_58 = arith.constant 0 : index
    %82 = vector.load %arg3[%c21, %c0_58] : memref<36x32xf32, #tpu.memory_space<vmem>>, vector<1x32xf32>
    %c22 = arith.constant 22 : index
    %c0_59 = arith.constant 0 : index
    %83 = vector.load %arg3[%c22, %c0_59] : memref<36x32xf32, #tpu.memory_space<vmem>>, vector<1x32xf32>
    %c23 = arith.constant 23 : index
    %c0_60 = arith.constant 0 : index
    %84 = vector.load %arg3[%c23, %c0_60] : memref<36x32xf32, #tpu.memory_space<vmem>>, vector<1x32xf32>
    %c24 = arith.constant 24 : index
    %c0_61 = arith.constant 0 : index
    %85 = vector.load %arg3[%c24, %c0_61] : memref<36x32xf32, #tpu.memory_space<vmem>>, vector<1x32xf32>
    %cst_62 = arith.constant dense<0.000000e+00> : vector<12xf32>
    %86 = vector.multi_reduction <add>, %54, %cst_62 [1] : vector<12x32xf32> to vector<12xf32>
    %87 = vector.shape_cast %86 : vector<12xf32> to vector<12x1xf32>
    %cst_63 = arith.constant 3.200000e+01 : f32
    %88 = vector.broadcast %cst_63 : f32 to vector<12x1xf32>
    %89 = arith.divf %87, %88 : vector<12x1xf32>
    %90 = arith.mulf %54, %54 : vector<12x32xf32>
    %cst_64 = arith.constant dense<0.000000e+00> : vector<12xf32>
    %91 = vector.multi_reduction <add>, %90, %cst_64 [1] : vector<12x32xf32> to vector<12xf32>
    %92 = vector.shape_cast %91 : vector<12xf32> to vector<12x1xf32>
    %cst_65 = arith.constant 3.200000e+01 : f32
    %93 = vector.broadcast %cst_65 : f32 to vector<12x1xf32>
    %94 = arith.divf %92, %93 : vector<12x1xf32>
    %95 = arith.mulf %89, %89 : vector<12x1xf32>
    %96 = arith.subf %94, %95 : vector<12x1xf32>
    %97 = vector.broadcast %89 : vector<12x1xf32> to vector<12x32xf32>
    %98 = arith.subf %54, %97 : vector<12x32xf32>
    %cst_66 = arith.constant 9.99999974E-6 : f32
    %99 = vector.broadcast %cst_66 : f32 to vector<12x1xf32>
    %100 = arith.addf %96, %99 : vector<12x1xf32>
    %101 = math.rsqrt %100 : vector<12x1xf32>
    %102 = vector.broadcast %101 : vector<12x1xf32> to vector<12x32xf32>
    %103 = arith.mulf %98, %102 : vector<12x32xf32>
    %104 = vector.broadcast %77 : vector<1x32xf32> to vector<12x32xf32>
    %105 = arith.mulf %103, %104 : vector<12x32xf32>
    %106 = vector.broadcast %78 : vector<1x32xf32> to vector<12x32xf32>
    %107 = arith.addf %105, %106 : vector<12x32xf32>
    %108 = arith.truncf %107 : vector<12x32xf32> to vector<12x32xbf16>
    %c0_67 = arith.constant 0 : index
    %c0_68 = arith.constant 0 : index
    %c0_69 = arith.constant 0 : index
    %109 = vector.load %arg9[%c0_67, %c0_68, %c0_69] : memref<8x32x32xbf16, #tpu.memory_space<vmem>>, vector<1x32x32xbf16>
    %110 = vector.shape_cast %109 : vector<1x32x32xbf16> to vector<32x32xbf16>
    %cst_70 = arith.constant dense<0.000000e+00> : vector<12x32xf32>
    %111 = tpu.matmul %108, %110, %cst_70 {dimension_numbers = #tpu.dot_dimension_numbers<[1], [0], [0], [1], [0, 0, 1, 1], [], []>} : vector<12x32xbf16>, vector<32x32xbf16>, vector<12x32xf32> -> vector<12x32xf32>
    %112 = vector.broadcast %79 : vector<1x32xf32> to vector<12x32xf32>
    %113 = arith.addf %111, %112 : vector<12x32xf32>
    %c1_71 = arith.constant 1 : index
    %c0_72 = arith.constant 0 : index
    %c0_73 = arith.constant 0 : index
    %114 = vector.load %arg9[%c1_71, %c0_72, %c0_73] : memref<8x32x32xbf16, #tpu.memory_space<vmem>>, vector<1x32x32xbf16>
    %115 = vector.shape_cast %114 : vector<1x32x32xbf16> to vector<32x32xbf16>
    %cst_74 = arith.constant dense<0.000000e+00> : vector<12x32xf32>
    %116 = tpu.matmul %108, %115, %cst_74 {dimension_numbers = #tpu.dot_dimension_numbers<[1], [0], [0], [1], [0, 0, 1, 1], [], []>} : vector<12x32xbf16>, vector<32x32xbf16>, vector<12x32xf32> -> vector<12x32xf32>
    %117 = vector.broadcast %80 : vector<1x32xf32> to vector<12x32xf32>
    %118 = arith.addf %116, %117 : vector<12x32xf32>
    %c2_75 = arith.constant 2 : index
    %c0_76 = arith.constant 0 : index
    %c0_77 = arith.constant 0 : index
    %119 = vector.load %arg9[%c2_75, %c0_76, %c0_77] : memref<8x32x32xbf16, #tpu.memory_space<vmem>>, vector<1x32x32xbf16>
    %120 = vector.shape_cast %119 : vector<1x32x32xbf16> to vector<32x32xbf16>
    %cst_78 = arith.constant dense<0.000000e+00> : vector<12x32xf32>
    %121 = tpu.matmul %108, %120, %cst_78 {dimension_numbers = #tpu.dot_dimension_numbers<[1], [0], [0], [1], [0, 0, 1, 1], [], []>} : vector<12x32xbf16>, vector<32x32xbf16>, vector<12x32xf32> -> vector<12x32xf32>
    %122 = vector.broadcast %81 : vector<1x32xf32> to vector<12x32xf32>
    %123 = arith.addf %121, %122 : vector<12x32xf32>
    %124 = arith.truncf %118 : vector<12x32xf32> to vector<12x32xbf16>
    %125 = vector.broadcast %74 : vector<1x32xf32> to vector<12x32xf32>
    %126 = arith.mulf %113, %125 : vector<12x32xf32>
    %127 = arith.truncf %126 : vector<12x32xf32> to vector<12x32xbf16>
    %cst_79 = arith.constant dense<0.000000e+00> : vector<12x12xf32>
    %128 = tpu.matmul %127, %124, %cst_79 {dimension_numbers = #tpu.dot_dimension_numbers<[1], [1], [0], [0], [0, 0, 1, 0], [], []>} : vector<12x32xbf16>, vector<12x32xbf16>, vector<12x12xf32> -> vector<12x12xf32>
    %cst_80 = arith.constant -1.000000e+30 : f32
    %129 = vector.broadcast %cst_80 : f32 to vector<12x12xf32>
    %130 = arith.select %57, %128, %129 : vector<12x12xi1>, vector<12x12xf32>
    %cst_81 = arith.constant dense<0xFF800000> : vector<12xf32>
    %131 = vector.multi_reduction <maximumf>, %130, %cst_81 [1] : vector<12x12xf32> to vector<12xf32>
    %132 = vector.shape_cast %131 : vector<12xf32> to vector<12x1xf32>
    %133 = vector.broadcast %132 : vector<12x1xf32> to vector<12x12xf32>
    %134 = arith.subf %130, %133 : vector<12x12xf32>
    %135 = math.exp %134 : vector<12x12xf32>
    %cst_82 = arith.constant dense<0.000000e+00> : vector<12xf32>
    %136 = vector.multi_reduction <add>, %135, %cst_82 [1] : vector<12x12xf32> to vector<12xf32>
    %137 = vector.shape_cast %136 : vector<12xf32> to vector<12x1xf32>
    %138 = tpu.reciprocal %137 {approx = true} : vector<12x1xf32> -> vector<12x1xf32>
    %139 = vector.broadcast %138 : vector<12x1xf32> to vector<12x12xf32>
    %140 = arith.mulf %135, %139 : vector<12x12xf32>
    %141 = vector.broadcast %65 : vector<1x32xf32> to vector<12x32xf32>
    %142 = arith.mulf %123, %141 : vector<12x32xf32>
    %143 = arith.truncf %142 : vector<12x32xf32> to vector<12x32xbf16>
    %144 = arith.truncf %140 : vector<12x12xf32> to vector<12x12xbf16>
    %cst_83 = arith.constant dense<0.000000e+00> : vector<12x32xf32>
    %145 = tpu.matmul %144, %143, %cst_83 {dimension_numbers = #tpu.dot_dimension_numbers<[1], [0], [0], [1], [0, 0, 1, 1], [], []>} : vector<12x12xbf16>, vector<12x32xbf16>, vector<12x32xf32> -> vector<12x32xf32>
    %146 = vector.broadcast %76 : vector<1x32xf32> to vector<12x32xf32>
    %147 = arith.mulf %113, %146 : vector<12x32xf32>
    %148 = arith.truncf %147 : vector<12x32xf32> to vector<12x32xbf16>
    %cst_84 = arith.constant dense<0.000000e+00> : vector<12x12xf32>
    %149 = tpu.matmul %148, %124, %cst_84 {dimension_numbers = #tpu.dot_dimension_numbers<[1], [1], [0], [0], [0, 0, 1, 0], [], []>} : vector<12x32xbf16>, vector<12x32xbf16>, vector<12x12xf32> -> vector<12x12xf32>
    %cst_85 = arith.constant -1.000000e+30 : f32
    %150 = vector.broadcast %cst_85 : f32 to vector<12x12xf32>
    %151 = arith.select %57, %149, %150 : vector<12x12xi1>, vector<12x12xf32>
    %cst_86 = arith.constant dense<0xFF800000> : vector<12xf32>
    %152 = vector.multi_reduction <maximumf>, %151, %cst_86 [1] : vector<12x12xf32> to vector<12xf32>
    %153 = vector.shape_cast %152 : vector<12xf32> to vector<12x1xf32>
    %154 = vector.broadcast %153 : vector<12x1xf32> to vector<12x12xf32>
    %155 = arith.subf %151, %154 : vector<12x12xf32>
    %156 = math.exp %155 : vector<12x12xf32>
    %cst_87 = arith.constant dense<0.000000e+00> : vector<12xf32>
    %157 = vector.multi_reduction <add>, %156, %cst_87 [1] : vector<12x12xf32> to vector<12xf32>
    %158 = vector.shape_cast %157 : vector<12xf32> to vector<12x1xf32>
    %159 = tpu.reciprocal %158 {approx = true} : vector<12x1xf32> -> vector<12x1xf32>
    %160 = vector.broadcast %159 : vector<12x1xf32> to vector<12x12xf32>
    %161 = arith.mulf %156, %160 : vector<12x12xf32>
    %162 = vector.broadcast %72 : vector<1x32xf32> to vector<12x32xf32>
    %163 = arith.mulf %123, %162 : vector<12x32xf32>
    %164 = arith.truncf %163 : vector<12x32xf32> to vector<12x32xbf16>
    %165 = arith.truncf %161 : vector<12x12xf32> to vector<12x12xbf16>
    %cst_88 = arith.constant dense<0.000000e+00> : vector<12x32xf32>
    %166 = tpu.matmul %165, %164, %cst_88 {dimension_numbers = #tpu.dot_dimension_numbers<[1], [0], [0], [1], [0, 0, 1, 1], [], []>} : vector<12x12xbf16>, vector<12x32xbf16>, vector<12x32xf32> -> vector<12x32xf32>
    %167 = arith.addf %145, %166 : vector<12x32xf32>
    %168 = arith.truncf %167 : vector<12x32xf32> to vector<12x32xbf16>
    %c3_89 = arith.constant 3 : index
    %c0_90 = arith.constant 0 : index
    %c0_91 = arith.constant 0 : index
    %169 = vector.load %arg9[%c3_89, %c0_90, %c0_91] : memref<8x32x32xbf16, #tpu.memory_space<vmem>>, vector<1x32x32xbf16>
    %170 = vector.shape_cast %169 : vector<1x32x32xbf16> to vector<32x32xbf16>
    %cst_92 = arith.constant dense<0.000000e+00> : vector<12x32xf32>
    %171 = tpu.matmul %168, %170, %cst_92 {dimension_numbers = #tpu.dot_dimension_numbers<[1], [0], [0], [1], [0, 0, 1, 1], [], []>} : vector<12x32xbf16>, vector<32x32xbf16>, vector<12x32xf32> -> vector<12x32xf32>
    %172 = arith.addf %54, %171 : vector<12x32xf32>
    %173 = vector.broadcast %82 : vector<1x32xf32> to vector<12x32xf32>
    %174 = arith.addf %172, %173 : vector<12x32xf32>
    %cst_93 = arith.constant dense<0.000000e+00> : vector<12xf32>
    %175 = vector.multi_reduction <add>, %174, %cst_93 [1] : vector<12x32xf32> to vector<12xf32>
    %176 = vector.shape_cast %175 : vector<12xf32> to vector<12x1xf32>
    %cst_94 = arith.constant 3.200000e+01 : f32
    %177 = vector.broadcast %cst_94 : f32 to vector<12x1xf32>
    %178 = arith.divf %176, %177 : vector<12x1xf32>
    %179 = arith.mulf %174, %174 : vector<12x32xf32>
    %cst_95 = arith.constant dense<0.000000e+00> : vector<12xf32>
    %180 = vector.multi_reduction <add>, %179, %cst_95 [1] : vector<12x32xf32> to vector<12xf32>
    %181 = vector.shape_cast %180 : vector<12xf32> to vector<12x1xf32>
    %cst_96 = arith.constant 3.200000e+01 : f32
    %182 = vector.broadcast %cst_96 : f32 to vector<12x1xf32>
    %183 = arith.divf %181, %182 : vector<12x1xf32>
    %184 = arith.mulf %178, %178 : vector<12x1xf32>
    %185 = arith.subf %183, %184 : vector<12x1xf32>
    %186 = vector.broadcast %178 : vector<12x1xf32> to vector<12x32xf32>
    %187 = arith.subf %174, %186 : vector<12x32xf32>
    %cst_97 = arith.constant 9.99999974E-6 : f32
    %188 = vector.broadcast %cst_97 : f32 to vector<12x1xf32>
    %189 = arith.addf %185, %188 : vector<12x1xf32>
    %190 = math.rsqrt %189 : vector<12x1xf32>
    %191 = vector.broadcast %190 : vector<12x1xf32> to vector<12x32xf32>
    %192 = arith.mulf %187, %191 : vector<12x32xf32>
    %193 = vector.broadcast %83 : vector<1x32xf32> to vector<12x32xf32>
    %194 = arith.mulf %192, %193 : vector<12x32xf32>
    %195 = vector.broadcast %84 : vector<1x32xf32> to vector<12x32xf32>
    %196 = arith.addf %194, %195 : vector<12x32xf32>
    %197 = arith.truncf %196 : vector<12x32xf32> to vector<12x32xbf16>
    %c0_98 = arith.constant 0 : index
    %c0_99 = arith.constant 0 : index
    %c0_100 = arith.constant 0 : index
    %198 = vector.load %arg10[%c0_98, %c0_99, %c0_100] : memref<2x32x128xbf16, #tpu.memory_space<vmem>>, vector<1x32x128xbf16>
    %199 = vector.shape_cast %198 : vector<1x32x128xbf16> to vector<32x128xbf16>
    %cst_101 = arith.constant dense<0.000000e+00> : vector<12x128xf32>
    %200 = tpu.matmul %197, %199, %cst_101 {dimension_numbers = #tpu.dot_dimension_numbers<[1], [0], [0], [1], [0, 0, 1, 1], [], []>} : vector<12x32xbf16>, vector<32x128xbf16>, vector<12x128xf32> -> vector<12x128xf32>
    %c0_102 = arith.constant 0 : index
    %c0_103 = arith.constant 0 : index
    %c0_104 = arith.constant 0 : index
    %201 = vector.load %arg11[%c0_102, %c0_103, %c0_104] : memref<2x1x128xf32, #tpu.memory_space<vmem>>, vector<1x1x128xf32>
    %202 = vector.shape_cast %201 : vector<1x1x128xf32> to vector<1x128xf32>
    %203 = vector.broadcast %202 : vector<1x128xf32> to vector<12x128xf32>
    %204 = arith.addf %200, %203 : vector<12x128xf32>
    %205 = arith.mulf %204, %204 : vector<12x128xf32>
    %206 = arith.mulf %204, %205 : vector<12x128xf32>
    %cst_105 = arith.constant 4.471500e-02 : f32
    %207 = vector.broadcast %cst_105 : f32 to vector<12x128xf32>
    %208 = arith.mulf %207, %206 : vector<12x128xf32>
    %209 = arith.addf %204, %208 : vector<12x128xf32>
    %cst_106 = arith.constant 0.797884583 : f32
    %210 = vector.broadcast %cst_106 : f32 to vector<12x128xf32>
    %211 = arith.mulf %210, %209 : vector<12x128xf32>
    %212 = math.tanh %211 : vector<12x128xf32>
    %cst_107 = arith.constant 1.000000e+00 : f32
    %213 = vector.broadcast %cst_107 : f32 to vector<12x128xf32>
    %214 = arith.addf %213, %212 : vector<12x128xf32>
    %cst_108 = arith.constant 5.000000e-01 : f32
    %215 = vector.broadcast %cst_108 : f32 to vector<12x128xf32>
    %216 = arith.mulf %215, %214 : vector<12x128xf32>
    %217 = arith.mulf %204, %216 : vector<12x128xf32>
    %218 = arith.truncf %217 : vector<12x128xf32> to vector<12x128xbf16>
    %c0_109 = arith.constant 0 : index
    %c0_110 = arith.constant 0 : index
    %c0_111 = arith.constant 0 : index
    %219 = vector.load %arg12[%c0_109, %c0_110, %c0_111] : memref<2x128x32xbf16, #tpu.memory_space<vmem>>, vector<1x128x32xbf16>
    %220 = vector.shape_cast %219 : vector<1x128x32xbf16> to vector<128x32xbf16>
    %cst_112 = arith.constant dense<0.000000e+00> : vector<12x32xf32>
    %221 = tpu.matmul %218, %220, %cst_112 {dimension_numbers = #tpu.dot_dimension_numbers<[1], [0], [0], [1], [0, 0, 1, 1], [], []>} : vector<12x128xbf16>, vector<128x32xbf16>, vector<12x32xf32> -> vector<12x32xf32>
    %222 = arith.addf %174, %221 : vector<12x32xf32>
    %223 = vector.broadcast %85 : vector<1x32xf32> to vector<12x32xf32>
    %224 = arith.addf %222, %223 : vector<12x32xf32>
    %c25 = arith.constant 25 : index
    %c0_113 = arith.constant 0 : index
    %225 = vector.load %arg3[%c25, %c0_113] : memref<36x32xf32, #tpu.memory_space<vmem>>, vector<1x32xf32>
    %c26 = arith.constant 26 : index
    %c0_114 = arith.constant 0 : index
    %226 = vector.load %arg3[%c26, %c0_114] : memref<36x32xf32, #tpu.memory_space<vmem>>, vector<1x32xf32>
    %c27 = arith.constant 27 : index
    %c0_115 = arith.constant 0 : index
    %227 = vector.load %arg3[%c27, %c0_115] : memref<36x32xf32, #tpu.memory_space<vmem>>, vector<1x32xf32>
    %c28 = arith.constant 28 : index
    %c0_116 = arith.constant 0 : index
    %228 = vector.load %arg3[%c28, %c0_116] : memref<36x32xf32, #tpu.memory_space<vmem>>, vector<1x32xf32>
    %c29 = arith.constant 29 : index
    %c0_117 = arith.constant 0 : index
    %229 = vector.load %arg3[%c29, %c0_117] : memref<36x32xf32, #tpu.memory_space<vmem>>, vector<1x32xf32>
    %c30 = arith.constant 30 : index
    %c0_118 = arith.constant 0 : index
    %230 = vector.load %arg3[%c30, %c0_118] : memref<36x32xf32, #tpu.memory_space<vmem>>, vector<1x32xf32>
    %c31 = arith.constant 31 : index
    %c0_119 = arith.constant 0 : index
    %231 = vector.load %arg3[%c31, %c0_119] : memref<36x32xf32, #tpu.memory_space<vmem>>, vector<1x32xf32>
    %c32 = arith.constant 32 : index
    %c0_120 = arith.constant 0 : index
    %232 = vector.load %arg3[%c32, %c0_120] : memref<36x32xf32, #tpu.memory_space<vmem>>, vector<1x32xf32>
    %c33 = arith.constant 33 : index
    %c0_121 = arith.constant 0 : index
    %233 = vector.load %arg3[%c33, %c0_121] : memref<36x32xf32, #tpu.memory_space<vmem>>, vector<1x32xf32>
    %cst_122 = arith.constant dense<0.000000e+00> : vector<12xf32>
    %234 = vector.multi_reduction <add>, %224, %cst_122 [1] : vector<12x32xf32> to vector<12xf32>
    %235 = vector.shape_cast %234 : vector<12xf32> to vector<12x1xf32>
    %cst_123 = arith.constant 3.200000e+01 : f32
    %236 = vector.broadcast %cst_123 : f32 to vector<12x1xf32>
    %237 = arith.divf %235, %236 : vector<12x1xf32>
    %238 = arith.mulf %224, %224 : vector<12x32xf32>
    %cst_124 = arith.constant dense<0.000000e+00> : vector<12xf32>
    %239 = vector.multi_reduction <add>, %238, %cst_124 [1] : vector<12x32xf32> to vector<12xf32>
    %240 = vector.shape_cast %239 : vector<12xf32> to vector<12x1xf32>
    %cst_125 = arith.constant 3.200000e+01 : f32
    %241 = vector.broadcast %cst_125 : f32 to vector<12x1xf32>
    %242 = arith.divf %240, %241 : vector<12x1xf32>
    %243 = arith.mulf %237, %237 : vector<12x1xf32>
    %244 = arith.subf %242, %243 : vector<12x1xf32>
    %245 = vector.broadcast %237 : vector<12x1xf32> to vector<12x32xf32>
    %246 = arith.subf %224, %245 : vector<12x32xf32>
    %cst_126 = arith.constant 9.99999974E-6 : f32
    %247 = vector.broadcast %cst_126 : f32 to vector<12x1xf32>
    %248 = arith.addf %244, %247 : vector<12x1xf32>
    %249 = math.rsqrt %248 : vector<12x1xf32>
    %250 = vector.broadcast %249 : vector<12x1xf32> to vector<12x32xf32>
    %251 = arith.mulf %246, %250 : vector<12x32xf32>
    %252 = vector.broadcast %225 : vector<1x32xf32> to vector<12x32xf32>
    %253 = arith.mulf %251, %252 : vector<12x32xf32>
    %254 = vector.broadcast %226 : vector<1x32xf32> to vector<12x32xf32>
    %255 = arith.addf %253, %254 : vector<12x32xf32>
    %256 = arith.truncf %255 : vector<12x32xf32> to vector<12x32xbf16>
    %c4_127 = arith.constant 4 : index
    %c0_128 = arith.constant 0 : index
    %c0_129 = arith.constant 0 : index
    %257 = vector.load %arg9[%c4_127, %c0_128, %c0_129] : memref<8x32x32xbf16, #tpu.memory_space<vmem>>, vector<1x32x32xbf16>
    %258 = vector.shape_cast %257 : vector<1x32x32xbf16> to vector<32x32xbf16>
    %cst_130 = arith.constant dense<0.000000e+00> : vector<12x32xf32>
    %259 = tpu.matmul %256, %258, %cst_130 {dimension_numbers = #tpu.dot_dimension_numbers<[1], [0], [0], [1], [0, 0, 1, 1], [], []>} : vector<12x32xbf16>, vector<32x32xbf16>, vector<12x32xf32> -> vector<12x32xf32>
    %260 = vector.broadcast %227 : vector<1x32xf32> to vector<12x32xf32>
    %261 = arith.addf %259, %260 : vector<12x32xf32>
    %c5 = arith.constant 5 : index
    %c0_131 = arith.constant 0 : index
    %c0_132 = arith.constant 0 : index
    %262 = vector.load %arg9[%c5, %c0_131, %c0_132] : memref<8x32x32xbf16, #tpu.memory_space<vmem>>, vector<1x32x32xbf16>
    %263 = vector.shape_cast %262 : vector<1x32x32xbf16> to vector<32x32xbf16>
    %cst_133 = arith.constant dense<0.000000e+00> : vector<12x32xf32>
    %264 = tpu.matmul %256, %263, %cst_133 {dimension_numbers = #tpu.dot_dimension_numbers<[1], [0], [0], [1], [0, 0, 1, 1], [], []>} : vector<12x32xbf16>, vector<32x32xbf16>, vector<12x32xf32> -> vector<12x32xf32>
    %265 = vector.broadcast %228 : vector<1x32xf32> to vector<12x32xf32>
    %266 = arith.addf %264, %265 : vector<12x32xf32>
    %c6 = arith.constant 6 : index
    %c0_134 = arith.constant 0 : index
    %c0_135 = arith.constant 0 : index
    %267 = vector.load %arg9[%c6, %c0_134, %c0_135] : memref<8x32x32xbf16, #tpu.memory_space<vmem>>, vector<1x32x32xbf16>
    %268 = vector.shape_cast %267 : vector<1x32x32xbf16> to vector<32x32xbf16>
    %cst_136 = arith.constant dense<0.000000e+00> : vector<12x32xf32>
    %269 = tpu.matmul %256, %268, %cst_136 {dimension_numbers = #tpu.dot_dimension_numbers<[1], [0], [0], [1], [0, 0, 1, 1], [], []>} : vector<12x32xbf16>, vector<32x32xbf16>, vector<12x32xf32> -> vector<12x32xf32>
    %270 = vector.broadcast %229 : vector<1x32xf32> to vector<12x32xf32>
    %271 = arith.addf %269, %270 : vector<12x32xf32>
    %272 = arith.truncf %266 : vector<12x32xf32> to vector<12x32xbf16>
    %273 = vector.broadcast %74 : vector<1x32xf32> to vector<12x32xf32>
    %274 = arith.mulf %261, %273 : vector<12x32xf32>
    %275 = arith.truncf %274 : vector<12x32xf32> to vector<12x32xbf16>
    %cst_137 = arith.constant dense<0.000000e+00> : vector<12x12xf32>
    %276 = tpu.matmul %275, %272, %cst_137 {dimension_numbers = #tpu.dot_dimension_numbers<[1], [1], [0], [0], [0, 0, 1, 0], [], []>} : vector<12x32xbf16>, vector<12x32xbf16>, vector<12x12xf32> -> vector<12x12xf32>
    %cst_138 = arith.constant -1.000000e+30 : f32
    %277 = vector.broadcast %cst_138 : f32 to vector<12x12xf32>
    %278 = arith.select %57, %276, %277 : vector<12x12xi1>, vector<12x12xf32>
    %cst_139 = arith.constant dense<0xFF800000> : vector<12xf32>
    %279 = vector.multi_reduction <maximumf>, %278, %cst_139 [1] : vector<12x12xf32> to vector<12xf32>
    %280 = vector.shape_cast %279 : vector<12xf32> to vector<12x1xf32>
    %281 = vector.broadcast %280 : vector<12x1xf32> to vector<12x12xf32>
    %282 = arith.subf %278, %281 : vector<12x12xf32>
    %283 = math.exp %282 : vector<12x12xf32>
    %cst_140 = arith.constant dense<0.000000e+00> : vector<12xf32>
    %284 = vector.multi_reduction <add>, %283, %cst_140 [1] : vector<12x12xf32> to vector<12xf32>
    %285 = vector.shape_cast %284 : vector<12xf32> to vector<12x1xf32>
    %286 = tpu.reciprocal %285 {approx = true} : vector<12x1xf32> -> vector<12x1xf32>
    %287 = vector.broadcast %286 : vector<12x1xf32> to vector<12x12xf32>
    %288 = arith.mulf %283, %287 : vector<12x12xf32>
    %289 = vector.broadcast %65 : vector<1x32xf32> to vector<12x32xf32>
    %290 = arith.mulf %271, %289 : vector<12x32xf32>
    %291 = arith.truncf %290 : vector<12x32xf32> to vector<12x32xbf16>
    %292 = arith.truncf %288 : vector<12x12xf32> to vector<12x12xbf16>
    %cst_141 = arith.constant dense<0.000000e+00> : vector<12x32xf32>
    %293 = tpu.matmul %292, %291, %cst_141 {dimension_numbers = #tpu.dot_dimension_numbers<[1], [0], [0], [1], [0, 0, 1, 1], [], []>} : vector<12x12xbf16>, vector<12x32xbf16>, vector<12x32xf32> -> vector<12x32xf32>
    %294 = vector.broadcast %76 : vector<1x32xf32> to vector<12x32xf32>
    %295 = arith.mulf %261, %294 : vector<12x32xf32>
    %296 = arith.truncf %295 : vector<12x32xf32> to vector<12x32xbf16>
    %cst_142 = arith.constant dense<0.000000e+00> : vector<12x12xf32>
    %297 = tpu.matmul %296, %272, %cst_142 {dimension_numbers = #tpu.dot_dimension_numbers<[1], [1], [0], [0], [0, 0, 1, 0], [], []>} : vector<12x32xbf16>, vector<12x32xbf16>, vector<12x12xf32> -> vector<12x12xf32>
    %cst_143 = arith.constant -1.000000e+30 : f32
    %298 = vector.broadcast %cst_143 : f32 to vector<12x12xf32>
    %299 = arith.select %57, %297, %298 : vector<12x12xi1>, vector<12x12xf32>
    %cst_144 = arith.constant dense<0xFF800000> : vector<12xf32>
    %300 = vector.multi_reduction <maximumf>, %299, %cst_144 [1] : vector<12x12xf32> to vector<12xf32>
    %301 = vector.shape_cast %300 : vector<12xf32> to vector<12x1xf32>
    %302 = vector.broadcast %301 : vector<12x1xf32> to vector<12x12xf32>
    %303 = arith.subf %299, %302 : vector<12x12xf32>
    %304 = math.exp %303 : vector<12x12xf32>
    %cst_145 = arith.constant dense<0.000000e+00> : vector<12xf32>
    %305 = vector.multi_reduction <add>, %304, %cst_145 [1] : vector<12x12xf32> to vector<12xf32>
    %306 = vector.shape_cast %305 : vector<12xf32> to vector<12x1xf32>
    %307 = tpu.reciprocal %306 {approx = true} : vector<12x1xf32> -> vector<12x1xf32>
    %308 = vector.broadcast %307 : vector<12x1xf32> to vector<12x12xf32>
    %309 = arith.mulf %304, %308 : vector<12x12xf32>
    %310 = vector.broadcast %72 : vector<1x32xf32> to vector<12x32xf32>
    %311 = arith.mulf %271, %310 : vector<12x32xf32>
    %312 = arith.truncf %311 : vector<12x32xf32> to vector<12x32xbf16>
    %313 = arith.truncf %309 : vector<12x12xf32> to vector<12x12xbf16>
    %cst_146 = arith.constant dense<0.000000e+00> : vector<12x32xf32>
    %314 = tpu.matmul %313, %312, %cst_146 {dimension_numbers = #tpu.dot_dimension_numbers<[1], [0], [0], [1], [0, 0, 1, 1], [], []>} : vector<12x12xbf16>, vector<12x32xbf16>, vector<12x32xf32> -> vector<12x32xf32>
    %315 = arith.addf %293, %314 : vector<12x32xf32>
    %316 = arith.truncf %315 : vector<12x32xf32> to vector<12x32xbf16>
    %c7 = arith.constant 7 : index
    %c0_147 = arith.constant 0 : index
    %c0_148 = arith.constant 0 : index
    %317 = vector.load %arg9[%c7, %c0_147, %c0_148] : memref<8x32x32xbf16, #tpu.memory_space<vmem>>, vector<1x32x32xbf16>
    %318 = vector.shape_cast %317 : vector<1x32x32xbf16> to vector<32x32xbf16>
    %cst_149 = arith.constant dense<0.000000e+00> : vector<12x32xf32>
    %319 = tpu.matmul %316, %318, %cst_149 {dimension_numbers = #tpu.dot_dimension_numbers<[1], [0], [0], [1], [0, 0, 1, 1], [], []>} : vector<12x32xbf16>, vector<32x32xbf16>, vector<12x32xf32> -> vector<12x32xf32>
    %320 = arith.addf %224, %319 : vector<12x32xf32>
    %321 = vector.broadcast %230 : vector<1x32xf32> to vector<12x32xf32>
    %322 = arith.addf %320, %321 : vector<12x32xf32>
    %cst_150 = arith.constant dense<0.000000e+00> : vector<12xf32>
    %323 = vector.multi_reduction <add>, %322, %cst_150 [1] : vector<12x32xf32> to vector<12xf32>
    %324 = vector.shape_cast %323 : vector<12xf32> to vector<12x1xf32>
    %cst_151 = arith.constant 3.200000e+01 : f32
    %325 = vector.broadcast %cst_151 : f32 to vector<12x1xf32>
    %326 = arith.divf %324, %325 : vector<12x1xf32>
    %327 = arith.mulf %322, %322 : vector<12x32xf32>
    %cst_152 = arith.constant dense<0.000000e+00> : vector<12xf32>
    %328 = vector.multi_reduction <add>, %327, %cst_152 [1] : vector<12x32xf32> to vector<12xf32>
    %329 = vector.shape_cast %328 : vector<12xf32> to vector<12x1xf32>
    %cst_153 = arith.constant 3.200000e+01 : f32
    %330 = vector.broadcast %cst_153 : f32 to vector<12x1xf32>
    %331 = arith.divf %329, %330 : vector<12x1xf32>
    %332 = arith.mulf %326, %326 : vector<12x1xf32>
    %333 = arith.subf %331, %332 : vector<12x1xf32>
    %334 = vector.broadcast %326 : vector<12x1xf32> to vector<12x32xf32>
    %335 = arith.subf %322, %334 : vector<12x32xf32>
    %cst_154 = arith.constant 9.99999974E-6 : f32
    %336 = vector.broadcast %cst_154 : f32 to vector<12x1xf32>
    %337 = arith.addf %333, %336 : vector<12x1xf32>
    %338 = math.rsqrt %337 : vector<12x1xf32>
    %339 = vector.broadcast %338 : vector<12x1xf32> to vector<12x32xf32>
    %340 = arith.mulf %335, %339 : vector<12x32xf32>
    %341 = vector.broadcast %231 : vector<1x32xf32> to vector<12x32xf32>
    %342 = arith.mulf %340, %341 : vector<12x32xf32>
    %343 = vector.broadcast %232 : vector<1x32xf32> to vector<12x32xf32>
    %344 = arith.addf %342, %343 : vector<12x32xf32>
    %345 = arith.truncf %344 : vector<12x32xf32> to vector<12x32xbf16>
    %c1_155 = arith.constant 1 : index
    %c0_156 = arith.constant 0 : index
    %c0_157 = arith.constant 0 : index
    %346 = vector.load %arg10[%c1_155, %c0_156, %c0_157] : memref<2x32x128xbf16, #tpu.memory_space<vmem>>, vector<1x32x128xbf16>
    %347 = vector.shape_cast %346 : vector<1x32x128xbf16> to vector<32x128xbf16>
    %cst_158 = arith.constant dense<0.000000e+00> : vector<12x128xf32>
    %348 = tpu.matmul %345, %347, %cst_158 {dimension_numbers = #tpu.dot_dimension_numbers<[1], [0], [0], [1], [0, 0, 1, 1], [], []>} : vector<12x32xbf16>, vector<32x128xbf16>, vector<12x128xf32> -> vector<12x128xf32>
    %c1_159 = arith.constant 1 : index
    %c0_160 = arith.constant 0 : index
    %c0_161 = arith.constant 0 : index
    %349 = vector.load %arg11[%c1_159, %c0_160, %c0_161] : memref<2x1x128xf32, #tpu.memory_space<vmem>>, vector<1x1x128xf32>
    %350 = vector.shape_cast %349 : vector<1x1x128xf32> to vector<1x128xf32>
    %351 = vector.broadcast %350 : vector<1x128xf32> to vector<12x128xf32>
    %352 = arith.addf %348, %351 : vector<12x128xf32>
    %353 = arith.mulf %352, %352 : vector<12x128xf32>
    %354 = arith.mulf %352, %353 : vector<12x128xf32>
    %cst_162 = arith.constant 4.471500e-02 : f32
    %355 = vector.broadcast %cst_162 : f32 to vector<12x128xf32>
    %356 = arith.mulf %355, %354 : vector<12x128xf32>
    %357 = arith.addf %352, %356 : vector<12x128xf32>
    %cst_163 = arith.constant 0.797884583 : f32
    %358 = vector.broadcast %cst_163 : f32 to vector<12x128xf32>
    %359 = arith.mulf %358, %357 : vector<12x128xf32>
    %360 = math.tanh %359 : vector<12x128xf32>
    %cst_164 = arith.constant 1.000000e+00 : f32
    %361 = vector.broadcast %cst_164 : f32 to vector<12x128xf32>
    %362 = arith.addf %361, %360 : vector<12x128xf32>
    %cst_165 = arith.constant 5.000000e-01 : f32
    %363 = vector.broadcast %cst_165 : f32 to vector<12x128xf32>
    %364 = arith.mulf %363, %362 : vector<12x128xf32>
    %365 = arith.mulf %352, %364 : vector<12x128xf32>
    %366 = arith.truncf %365 : vector<12x128xf32> to vector<12x128xbf16>
    %c1_166 = arith.constant 1 : index
    %c0_167 = arith.constant 0 : index
    %c0_168 = arith.constant 0 : index
    %367 = vector.load %arg12[%c1_166, %c0_167, %c0_168] : memref<2x128x32xbf16, #tpu.memory_space<vmem>>, vector<1x128x32xbf16>
    %368 = vector.shape_cast %367 : vector<1x128x32xbf16> to vector<128x32xbf16>
    %cst_169 = arith.constant dense<0.000000e+00> : vector<12x32xf32>
    %369 = tpu.matmul %366, %368, %cst_169 {dimension_numbers = #tpu.dot_dimension_numbers<[1], [0], [0], [1], [0, 0, 1, 1], [], []>} : vector<12x128xbf16>, vector<128x32xbf16>, vector<12x32xf32> -> vector<12x32xf32>
    %370 = arith.addf %322, %369 : vector<12x32xf32>
    %371 = vector.broadcast %233 : vector<1x32xf32> to vector<12x32xf32>
    %372 = arith.addf %370, %371 : vector<12x32xf32>
    %c34 = arith.constant 34 : index
    %c0_170 = arith.constant 0 : index
    %373 = vector.load %arg3[%c34, %c0_170] : memref<36x32xf32, #tpu.memory_space<vmem>>, vector<1x32xf32>
    %c35 = arith.constant 35 : index
    %c0_171 = arith.constant 0 : index
    %374 = vector.load %arg3[%c35, %c0_171] : memref<36x32xf32, #tpu.memory_space<vmem>>, vector<1x32xf32>
    %cst_172 = arith.constant dense<0.000000e+00> : vector<12xf32>
    %375 = vector.multi_reduction <add>, %372, %cst_172 [1] : vector<12x32xf32> to vector<12xf32>
    %376 = vector.shape_cast %375 : vector<12xf32> to vector<12x1xf32>
    %cst_173 = arith.constant 3.200000e+01 : f32
    %377 = vector.broadcast %cst_173 : f32 to vector<12x1xf32>
    %378 = arith.divf %376, %377 : vector<12x1xf32>
    %379 = arith.mulf %372, %372 : vector<12x32xf32>
    %cst_174 = arith.constant dense<0.000000e+00> : vector<12xf32>
    %380 = vector.multi_reduction <add>, %379, %cst_174 [1] : vector<12x32xf32> to vector<12xf32>
    %381 = vector.shape_cast %380 : vector<12xf32> to vector<12x1xf32>
    %cst_175 = arith.constant 3.200000e+01 : f32
    %382 = vector.broadcast %cst_175 : f32 to vector<12x1xf32>
    %383 = arith.divf %381, %382 : vector<12x1xf32>
    %384 = arith.mulf %378, %378 : vector<12x1xf32>
    %385 = arith.subf %383, %384 : vector<12x1xf32>
    %386 = vector.broadcast %378 : vector<12x1xf32> to vector<12x32xf32>
    %387 = arith.subf %372, %386 : vector<12x32xf32>
    %cst_176 = arith.constant 9.99999974E-6 : f32
    %388 = vector.broadcast %cst_176 : f32 to vector<12x1xf32>
    %389 = arith.addf %385, %388 : vector<12x1xf32>
    %390 = math.rsqrt %389 : vector<12x1xf32>
    %391 = vector.broadcast %390 : vector<12x1xf32> to vector<12x32xf32>
    %392 = arith.mulf %387, %391 : vector<12x32xf32>
    %393 = vector.broadcast %373 : vector<1x32xf32> to vector<12x32xf32>
    %394 = arith.mulf %392, %393 : vector<12x32xf32>
    %395 = vector.broadcast %374 : vector<1x32xf32> to vector<12x32xf32>
    %396 = arith.addf %394, %395 : vector<12x32xf32>
    %397 = arith.truncf %396 : vector<12x32xf32> to vector<12x32xbf16>
    %c0_177 = arith.constant 0 : index
    %c0_178 = arith.constant 0 : index
    %398 = vector.load %arg5[%c0_177, %c0_178] : memref<32x128xbf16, #tpu.memory_space<vmem>>, vector<32x128xbf16>
    %cst_179 = arith.constant dense<0.000000e+00> : vector<12x128xf32>
    %399 = tpu.matmul %397, %398, %cst_179 {dimension_numbers = #tpu.dot_dimension_numbers<[1], [0], [0], [1], [0, 0, 1, 1], [], []>} : vector<12x32xbf16>, vector<32x128xbf16>, vector<12x128xf32> -> vector<12x128xf32>
    %c0_180 = arith.constant 0 : index
    %c0_181 = arith.constant 0 : index
    %c0_182 = arith.constant 0 : index
    %400 = vector.load %arg13[%c0_180, %c0_181, %c0_182] : memref<1x12x128xf32, #tpu.memory_space<vmem>>, vector<1x12x128xf32>
    %401 = vector.shape_cast %400 : vector<1x12x128xf32> to vector<12x128xf32>
    %402 = vector.shape_cast %399 : vector<12x128xf32> to vector<1x12x128xf32>
    tpu.vector_store %arg13[%c0_180, %c0_181, %c0_182], %402 {strides = array<i32>} : memref<1x12x128xf32, #tpu.memory_space<vmem>>, vector<1x12x128xf32>,
    return
  }
  func.func @transform_0(%arg0: i32) -> (i32, i32, i32) {
    %c0_i32 = arith.constant 0 : i32
    %c0_i32_0 = arith.constant 0 : i32
    %c0_i32_1 = arith.constant 0 : i32
    return %arg0, %c0_i32, %c0_i32_0 : i32, i32, i32
  }
  func.func @transform_1(%arg0: i32) -> (i32, i32, i32) {
    %c0_i32 = arith.constant 0 : i32
    %c0_i32_0 = arith.constant 0 : i32
    %c0_i32_1 = arith.constant 0 : i32
    return %arg0, %c0_i32, %c0_i32_0 : i32, i32, i32
  }
  func.func @transform_2(%arg0: i32) -> (i32, i32) {
    %c0_i32 = arith.constant 0 : i32
    %c0_i32_0 = arith.constant 0 : i32
    %c0_i32_1 = arith.constant 0 : i32
    return %c0_i32, %c0_i32_0 : i32, i32
  }
  func.func @transform_3(%arg0: i32) -> (i32, i32) {
    %c0_i32 = arith.constant 0 : i32
    %c0_i32_0 = arith.constant 0 : i32
    %c0_i32_1 = arith.constant 0 : i32
    return %c0_i32, %c0_i32_0 : i32, i32
  }
  func.func @transform_4(%arg0: i32) -> (i32, i32) {
    %c0_i32 = arith.constant 0 : i32
    %c0_i32_0 = arith.constant 0 : i32
    %c0_i32_1 = arith.constant 0 : i32
    return %c0_i32, %c0_i32_0 : i32, i32
  }
  func.func @transform_5(%arg0: i32) -> (i32, i32) {
    %c0_i32 = arith.constant 0 : i32
    %c0_i32_0 = arith.constant 0 : i32
    %c0_i32_1 = arith.constant 0 : i32
    return %c0_i32, %c0_i32_0 : i32, i32
  }
  func.func @transform_6(%arg0: i32) -> (i32, i32) {
    %c0_i32 = arith.constant 0 : i32
    %c0_i32_0 = arith.constant 0 : i32
    %c0_i32_1 = arith.constant 0 : i32
    return %c0_i32, %c0_i32_0 : i32, i32
  }
  func.func @transform_7(%arg0: i32) -> (i32, i32, i32) {
    %c0_i32 = arith.constant 0 : i32
    %c0_i32_0 = arith.constant 0 : i32
    %c0_i32_1 = arith.constant 0 : i32
    %c0_i32_2 = arith.constant 0 : i32
    return %c0_i32, %c0_i32_0, %c0_i32_1 : i32, i32, i32
  }
  func.func @transform_8(%arg0: i32) -> (i32, i32, i32) {
    %c0_i32 = arith.constant 0 : i32
    %c0_i32_0 = arith.constant 0 : i32
    %c0_i32_1 = arith.constant 0 : i32
    %c0_i32_2 = arith.constant 0 : i32
    return %c0_i32, %c0_i32_0, %c0_i32_1 : i32, i32, i32
  }
  func.func @transform_9(%arg0: i32) -> (i32, i32, i32) {
    %c0_i32 = arith.constant 0 : i32
    %c0_i32_0 = arith.constant 0 : i32
    %c0_i32_1 = arith.constant 0 : i32
    %c0_i32_2 = arith.constant 0 : i32
    return %c0_i32, %c0_i32_0, %c0_i32_1 : i32, i32, i32
  }
  func.func @transform_10(%arg0: i32) -> (i32, i32, i32) {
    %c0_i32 = arith.constant 0 : i32
    %c0_i32_0 = arith.constant 0 : i32
    %c0_i32_1 = arith.constant 0 : i32
    %c0_i32_2 = arith.constant 0 : i32
    return %c0_i32, %c0_i32_0, %c0_i32_1 : i32, i32, i32
  }
  func.func @transform_11(%arg0: i32) -> (i32, i32, i32) {
    %c0_i32 = arith.constant 0 : i32
    %c0_i32_0 = arith.constant 0 : i32
    %c0_i32_1 = arith.constant 0 : i32
    %c0_i32_2 = arith.constant 0 : i32
    return %c0_i32, %c0_i32_0, %c0_i32_1 : i32, i32, i32
  }
  func.func @transform_12(%arg0: i32) -> (i32, i32, i32) {
    %c0_i32 = arith.constant 0 : i32
    %c0_i32_0 = arith.constant 0 : i32
    %c0_i32_1 = arith.constant 0 : i32
    return %arg0, %c0_i32, %c0_i32_0 : i32, i32, i32
  }
}

</mosaic_0001>

<bundles_post_ra>
// kernel: clip_caption_forward.1
= control target key start
LH: loop header
LB: loop body
LE: loop exit
PB: predicated region body
PF: predicated region fallthrough
CT: control target
= control target key end

     0   :  { %s3492_s21 = smov 0   ;;  %s4145_s0 = inlined_call_operand.vmem [shape: s32[2,8,1], index: 0, kind: input, shape index: {}]   ;;  %s4146_s1 = inlined_call_operand.vmem [shape: f32[2,1,32], index: 1, kind: input, shape index: {}]   ;;  %s4147_s2 = inlined_call_operand.vmem [shape: f32[36,32], index: 2, kind: input, shape index: {}]   ;;  %s4148_s3 = inlined_call_operand.vmem [shape: bf16[128,32], index: 3, kind: input, shape index: {}]   ;;  %s4149_s4 = inlined_call_operand.vmem [shape: bf16[32,128], index: 4, kind: input, shape index: {}]   ;;  %s4150_s5 = inlined_call_operand.vmem [shape: bf16[32,64], index: 5, kind: input, shape index: {}]   ;;  %s4151_s6 = inlined_call_operand.vmem [shape: f32[1,64], index: 6, kind: input, shape index: {}]   ;;  %s4152_s7 = inlined_call_operand.vmem [shape: bf16[4,64,32], index: 7, kind: input, shape index: {}]   ;;  %s4153_s8 = inlined_call_operand.vmem [shape: bf16[8,32,32], index: 8, kind: input, shape index: {}]   ;;  %s4154_s9 = inlined_call_operand.vmem [shape: bf16[2,32,128], index: 9, kind: input, shape index: {}]   ;;  %s4155_s10 = inlined_call_operand.vmem [shape: f32[2,1,128], index: 10, kind: input, shape index: {}]   ;;  %s4156_s11 = inlined_call_operand.vmem [shape: bf16[2,128,32], index: 11, kind: input, shape index: {}]   ;;  %s4157_s12 = inlined_call_operand.vmem [shape: f32[2,12,128], index: 12, kind: output, shape index: {}]  }
   0x1 LB: > { %s2718_s22 = sadd.s32 4294967295, %s3421_s21   ;;  %p2722_p0 = scmp.ge.s32.totalorder %s3421_s21, 1  ;;  %s3421_s21 = sphi %s3492_s21, %s22_s21  }
   0x2   : > { %p369_p1 = scmp.lt.s32.totalorder %s3421_s21, 3 }
   0x4   : > { %p370_p2 = pnand %p2722_p0, %p369_p1 }
   0x5   : > { %v3289_v0 = vld [vmem:[%s4150_s5] sm:$0xff] (!%p370_p2)   ;;  %v3423_v1 = vmov (!%p370_p2), 0.0   ;;  %v3290_v2 = vld [vmem:[%s4150_s5 + $0x8] sm:$0xff] (!%p370_p2)   ;;  %vm3424_vm0 = vmmov (!%p370_p2), 0   ;;  %p413_p3 = scmp.lt.s32.totalorder (!%p370_p2), %s2718_s22, 1  ;;  %v3425_v3 = vmov (!%p370_p2), 0   ;;  %v804_v37 = vlaneseq (!%p370_p2) }
   0x6   : > { %373 = sbr.rel (%p370_p2) target bundleno = 4952 (0x1358), region = 68  ;;  %3016 = vmatprep.subr.bf16.mxu0 (!%p370_p2), %v3423_v1  ;;  %3024 = vmatprep.subr.bf16.mxu1 (!%p370_p2), %v3423_v1  ;;  %vm445_vm1 = vcmask (!%p370_p2), 261120   ;;  %v3291_v7 = vld [vmem:[%s4152_s7] sm:$0xff] (!%p370_p2)   ;;  %v3293_v9 = vld [vmem:[%s4152_s7 + $0x8] sm:$0xff] (!%p370_p2)   ;;  %v3295_v11 = vld [vmem:[%s4152_s7 + $0x10] sm:$0xff] (!%p370_p2)   ;;  %vm524_vm2 = vcmask (!%p370_p2), 523264  }
   0x7   : > { %3017 = vmatpush3.bf16.msra.mxu0 (!%p370_p2), %v3289_v0  ;;  %3020 = vmatprep.mubr.msk.bf16.mxu0 (!%p370_p2), %vm3424_vm0, %v3423_v1  ;;  %v3292_v8 = vld [vmem:[%s4152_s7 + $0x20] sm:$0xff] (!%p370_p2)   ;;  %v3294_v10 = vld [vmem:[%s4152_s7 + $0x28] sm:$0xff] (!%p370_p2)   ;;  %v3296_v12 = vld [vmem:[%s4152_s7 + $0x30] sm:$0xff] (!%p370_p2)   ;;  %v3634_v39 = vand.u32 (!%p370_p2), 127, %v804_v37  ;;  %v3426_v42 = vmov (!%p370_p2), 1.0|1.0  }
   0x8   : > { %3018 = vmatprep.subr.bf16.mxu0 (!%p370_p2), %v3423_v1  ;;  %3288 = vset.pattern.permute.xlu0 (!%p370_p2), %v3425_v3  ;;  %v3297_v13 = vld [vmem:[%s4152_s7 + $0x18] sm:$0xff] (!%p370_p2)   ;;  %v432_v15 = vld [vmem:[%s4151_s6] sm:$0x1] (!%p370_p2)  ;;  %v3301_v25 = vld [vmem:[%s4152_s7 + $0x48] sm:$0xff] (!%p370_p2)   ;;  %vm570_vm5 = vcmask (!%p370_p2), 253952   ;;  %vm950_vm6 = vcmask (!%p370_p2), 257024  }
   0x9   : > { %3032 = vmatprep.mubr.msk.bf16.mxu1 (!%p370_p2), %vm3424_vm0, %v3423_v1  ;;  %3025 = vmatpush3.bf16.msra.mxu1 (!%p370_p2), %v3291_v7  ;;  %v3298_v14 = vld [vmem:[%s4152_s7 + $0x38] sm:$0xff] (!%p370_p2)   ;;  %v3299_v22 = vld [vmem:[%s4152_s7 + $0x40] sm:$0xff] (!%p370_p2)   ;;  %v3302_v26 = vld [vmem:[%s4152_s7 + $0x68] sm:$0xff] (!%p370_p2)   ;;  %vm931_vm7 = vcmp.ge.s32.totalorder (!%p370_p2), %v3634_v39, 16  ;;  %vm932_vm8 = vcmp.lt.s32.totalorder (!%p370_p2), %v3634_v39, 32  ;;  %vm927_vm9 = vcmp.lt.s32.totalorder (!%p370_p2), %v3634_v39, 16 }
   0xa   : > { %3026 = vmatprep.subr.bf16.mxu1 (!%p370_p2), %v3423_v1  ;;  %v3300_v23 = vld [vmem:[%s4152_s7 + $0x60] sm:$0xff] (!%p370_p2)   ;;  %v3303_v27 = vld [vmem:[%s4152_s7 + $0x50] sm:$0xff] (!%p370_p2)   ;;  %v3305_v29 = vld [vmem:[%s4152_s7 + $0x58] sm:$0xff] (!%p370_p2)   ;;  %vm1339_vm11 = vcmask (!%p370_p2), 1045504   ;;  %vm1233_vm13 = vcmask (!%p370_p2), 97280   ;;  %vm1237_vm15 = vcmask (!%p370_p2), 93184  }
   0xb   : > { %3019 = vmatpush3.bf16.msra.mxu0 (!%p370_p2), %v3290_v2  ;;  %v3304_v28 = vld [vmem:[%s4152_s7 + $0x70] sm:$0xff] (!%p370_p2)   ;;  %v3306_v30 = vld [vmem:[%s4152_s7 + $0x78] sm:$0xff] (!%p370_p2)   ;;  %v3307_v31 = vld [vmem:[%s4148_s3] sm:$0xff] (!%p370_p2)  }
   0xc   : > { %3036 = vmatprep.subr.bf16.mxu0 (!%p370_p2), %v3423_v1  ;;  %v3308_v32 = vld [vmem:[%s4148_s3 + $0x8] sm:$0xff] (!%p370_p2)   ;;  %v3309_v33 = vld [vmem:[%s4148_s3 + $0x10] sm:$0xff] (!%p370_p2)   ;;  %v3310_v34 = vld [vmem:[%s4148_s3 + $0x18] sm:$0xff] (!%p370_p2)  }
   0xd   : > { %s4159_s22 = smov (!%p413_p3, %s2718_s22), 1  ;;  %3027 = vmatpush3.bf16.msra.mxu1 %v3293_v9  ;;  %v3311_v35 = vld [vmem:[%s4148_s3 + $0x20] sm:$0xff]   ;;  %v3312_v36 = vld [vmem:[%s4148_s3 + $0x28] sm:$0xff]   ;;  %v3313_v38 = vld [vmem:[%s4148_s3 + $0x30] sm:$0xff]  }
   0xe   : > { %s419_s29 = scalar_lea.vmem %s4146_s1, %s4159_s22  ;;  %s2723_s30 = sshll.u32 %s4159_s22, 3  ;;  %3028 = vmatprep.subr.bf16.mxu1 %v3423_v1  ;;  %v3314_v41 = vld [vmem:[%s4148_s3 + $0x38] sm:$0xff]   ;;  %v499_v43 = vld [vmem:[%s4147_s2 + $0xc] sm:$0x1]  ;;  %v581_v44 = vld [vmem:[%s4147_s2 + $0xd] sm:$0x1] }
   0xf   : > { %v426_v4 = vld [vmem:[%s419_s29] sm:$0x1]  ;;  %s416_s15 = scalar_lea.vmem %s4145_s0, %s2723_s30  ;;  %v646_v48 = vld [vmem:[%s4147_s2 + $0x1] sm:$0x1]  ;;  %v658_v59 = vld [vmem:[%s4147_s2 + $0xe] sm:$0x1] }
  0x10   : > { %v427_v5 = vpack.c.bf16 %v426_v4, %v426_v4  ;;  %v803_v6 = vld [vmem:[%s416_s15] sm:$0xff]  ;;  %v735_v60 = vld [vmem:[%s4147_s2 + $0xf] sm:$0x1]  ;;  %vm933_vm10 = vmand %vm931_vm7, %vm932_vm8  ;;  %s2916_s30 = sshll.u32 %s4159_s22, 4 }
  0x11   : > { %807 = vperm.xlu0 %3288, %v803_v6   ;;  %3029 = vmatpush3.bf16.msra.mxu1 %v3295_v11  ;;  %v568_v46 = vld [vmem:[%s4147_s2] sm:$0x1]  ;;  %v723_v62 = vld [vmem:[%s4147_s2 + $0x2] sm:$0x1]  ;;  %v800_v0 = vld [vmem:[%s4147_s2 + $0x3] sm:$0x1]  ;;  %s424_s15 = scalar_lea.vmem %s4157_s12, %s2916_s30 }
  0x12   : > { %3021 = vmatmul.mubr.msk.bf16.vlgmr.msra.gmra.mrb[0].mxu0 %vm445_vm1, %v427_v5  ;;  %3030 = vmatprep.subr.bf16.mxu1 %v3423_v1 }
  0x13   : > { %3044 = vmatprep.mubr.msk.bf16.mxu0 %vm3424_vm0, %v3423_v1  ;;  %3037 = vmatpush3.bf16.msra.mxu0 %v3292_v8 }
  0x14   : > { %3038 = vmatprep.subr.bf16.mxu0 %v3423_v1 }
  0x15   : > { %3031 = vmatpush3.bf16.msra.mxu1 %v3297_v13 }
  0x16   : > { %3048 = vmatprep.subr.bf16.mxu1 %v3423_v1 }
  0x17   : > { %3039 = vmatpush3.bf16.msra.mxu0 %v3294_v10 }
  0x18   : > { %3040 = vmatprep.subr.bf16.mxu0 %v3423_v1 }
  0x1b   : > { %3041 = vmatpush3.bf16.msra.mxu0 %v3296_v12  ;;  %v829_v12 = vld [vmem:[%s4147_s2 + $0x4] sm:$0xff] }
  0x1c   : > { %3042 = vmatprep.subr.bf16.mxu0 %v3423_v1 }
  0x1f   : > { %3043 = vmatpush3.bf16.msra.mxu0 %v3298_v14 }
  0x20   : > { %3060 = vmatprep.subr.bf16.mxu0 %v3423_v1 }
  0x90   : > { %v808_v40 = vpop.permute.xlu0 %807 }
  0x91   : > { %vm809_vm3 = vcmp.eq.s32.totalorder %v3634_v39, %v808_v40 }
  0x92   : > { %vm2782_vm4 = vmpackc.low %vm809_vm3, %vm809_vm3 }
  0xe5   : > { %v483_v16 = vpop.f32.mrb[0].mxu0 }
  0xe6   : > { %v484_v17 = vadd.f32 %v483_v16, %v432_v15  ;;  %v3022_v18 = vpop.f32.mrb[1].mxu0 }
  0xe7   : > { %v486_v19 = vpop.f32.mrb[2].mxu0 }
  0xe8   : > { %3353 = vtanh.f32 %v484_v17  ;;  %v3023_v20 = vpop.f32.mrb[3].mxu0 }
  0xf2   : > { %v3354_v21 = vpop.eup %3353 }
  0xf3   : > { %v490_v24 = vpack.c.bf16 %v3354_v21, %v3354_v21 }
  0xf5   : > { %3033 = vmatmul.mubr.msk.bf16.vlgmr.msra.gmra.mrb[0].mxu1 %vm524_vm2, %v490_v24  ;;  %3045 = vmatmul.mubr.msk.bf16.vlgmr.msra.gmra.mrb[4].mxu0 %vm524_vm2, %v490_v24 }
  0xf6   : > { %3049 = vmatpush3.bf16.msra.mxu1 %v3299_v22  ;;  %3061 = vmatpush3.bf16.msra.mxu0 %v3300_v23 }
  0xf7   : > { %3050 = vmatprep.subr.bf16.mxu1 %v3423_v1  ;;  %3062 = vmatprep.subr.bf16.mxu0 %v3423_v1 }
  0xf8   : > { %3056 = vmatprep.mubr.msk.bf16.mxu1 %vm3424_vm0, %v3423_v1  ;;  %3068 = vmatprep.mubr.msk.bf16.mxu0 %vm3424_vm0, %v3423_v1 }
  0xfa   : > { %3051 = vmatpush3.bf16.msra.mxu1 %v3301_v25  ;;  %3063 = vmatpush3.bf16.msra.mxu0 %v3302_v26  ;;  %v3315_v26 = vld [vmem:[%s4153_s8] sm:$0xff]  }
  0xfb   : > { %3052 = vmatprep.subr.bf16.mxu1 %v3423_v1  ;;  %3064 = vmatprep.subr.bf16.mxu0 %v3423_v1 }
  0xfe   : > { %3053 = vmatpush3.bf16.msra.mxu1 %v3303_v27  ;;  %3065 = vmatpush3.bf16.msra.mxu0 %v3304_v28  ;;  %v3316_v27 = vld [vmem:[%s4153_s8 + $0x8] sm:$0xff]  }
  0xff   : > { %3054 = vmatprep.subr.bf16.mxu1 %v3423_v1  ;;  %3066 = vmatprep.subr.bf16.mxu0 %v3423_v1 }
 0x102   : > { %3055 = vmatpush3.bf16.msra.mxu1 %v3305_v29  ;;  %3067 = vmatpush3.bf16.msra.mxu0 %v3306_v30 }
 0x103   : > { %3072 = vmatprep.subr.bf16.mxu1 %v3423_v1  ;;  %3092 = vmatprep.subr.bf16.mxu0 %v3423_v1 }
 0x105   : > { %3057 = vmatmul.mubr.msk.bf16.vlgmr.msra.gmra.mrb[4].mxu1 %vm524_vm2, %v490_v24  ;;  %3069 = vmatmul.mubr.msk.bf16.vlgmr.msra.gmra.mrb[8].mxu0 %vm524_vm2, %v490_v24 }
 0x106   : > { %3073 = vmatpush3.bf16.msra.mxu1 %v3307_v31  ;;  %3088 = vmatprep.mubr.msk.bf16.mxu1 %vm3424_vm0, %v3423_v1 }
 0x107   : > { %3074 = vmatprep.subr.bf16.mxu1 %v3423_v1  ;;  %3096 = vmatprep.mubr.msk.bf16.mxu0 %vm3424_vm0, %v3423_v1 }
 0x108   : > { %3093 = vmatpush3.bf16.msra.mxu0 %v3315_v26 }
 0x109   : > { %3094 = vmatprep.subr.bf16.mxu0 %v3423_v1 }
 0x10a   : > { %3075 = vmatpush3.bf16.msra.mxu1 %v3308_v32 }
 0x10b   : > { %3076 = vmatprep.subr.bf16.mxu1 %v3423_v1 }
 0x10c   : > { %3095 = vmatpush3.bf16.msra.mxu0 %v3316_v27 }
 0x10d   : > { %3100 = vmatprep.subr.bf16.mxu0 %v3423_v1 }
 0x10e   : > { %3077 = vmatpush3.bf16.msra.mxu1 %v3309_v33 }
 0x10f   : > { %3078 = vmatprep.subr.bf16.mxu1 %v3423_v1 }
 0x112   : > { %3079 = vmatpush3.bf16.msra.mxu1 %v3310_v34 }
 0x113   : > { %3080 = vmatprep.subr.bf16.mxu1 %v3423_v1 }
 0x116   : > { %3081 = vmatpush3.bf16.msra.mxu1 %v3311_v35 }
 0x117   : > { %3082 = vmatprep.subr.bf16.mxu1 %v3423_v1 }
 0x11a   : > { %3083 = vmatpush3.bf16.msra.mxu1 %v3312_v36 }
 0x11b   : > { %3084 = vmatprep.subr.bf16.mxu1 %v3423_v1 }
 0x11e   : > { %3085 = vmatpush3.bf16.msra.mxu1 %v3313_v38 }
 0x11f   : > { %3086 = vmatprep.subr.bf16.mxu1 %v3423_v1 }
 0x122   : > { %3087 = vmatpush3.bf16.msra.mxu1 %v3314_v41 }
 0x123   : > { %3140 = vmatprep.subr.bf16.mxu1 %v3423_v1 }
 0x125   : > { %3089 = vmatmul.mubr.msk.bf16.vlgmr.msra.gmra.mrb[8].mxu1 %vm2782_vm4, %v3426_v42 }
 0x126   : > { %3144 = vmatprep.mubr.msk.bf16.mxu1 %vm3424_vm0, %v3423_v1 }
 0x1c8   : > { %v562_v45 = vpop.f32.mrb[0].mxu1  ;;  %v640_v47 = vpop.f32.mrb[4].mxu0 }
 0x1c9   : > { %v563_v49 = vadd.f32 %v562_v45, %v499_v43  ;;  %v641_v50 = vadd.f32 %v640_v47, %v581_v44  ;;  %v3034_v51 = vpop.f32.mrb[1].mxu1  ;;  %v3046_v52 = vpop.f32.mrb[5].mxu0  ;;  %v2786_v47 = vld [vmem:[%s4147_s2 + $0x10] ss:$0 sm:$0xff] }
 0x1ca   : > { %v565_v53 = vpop.f32.mrb[2].mxu1  ;;  %v643_v54 = vpop.f32.mrb[6].mxu0  ;;  %v2787_v52 = vld [vmem:[%s4147_s2 + $0x11] ss:$0 sm:$0xff] }
 0x1cb   : > { %v569_v55 = vadd.f32 %v568_v46, %v563_v49  ;;  %v647_v56 = vadd.f32 %v646_v48, %v641_v50  ;;  %v3035_v57 = vpop.f32.mrb[3].mxu1  ;;  %v3047_v58 = vpop.f32.mrb[7].mxu0 }
 0x1cc   : > { %v3318_v58 = vld [vmem:[%s4153_s8 + $0x18] sm:$0xff]  }
 0x1cd   : > { %571 = vst.msk [vmem:[#allocation2] sm:$0x1] %vm570_vm5, %v569_v55  ;;  %648 = vst.msk [vmem:[#allocation2 + $0x1] sm:$0x1] %vm570_vm5, %v647_v56  ;;  %v3317_v56 = vld [vmem:[%s4153_s8 + $0x10] sm:$0xff]  }
 0x1d8   : > { %v717_v61 = vpop.f32.mrb[4].mxu1  ;;  %v794_v63 = vpop.f32.mrb[8].mxu0 }
 0x1d9   : > { %v718_v2 = vadd.f32 %v717_v61, %v658_v59  ;;  %v795_v3 = vadd.f32 %v794_v63, %v735_v60  ;;  %v3058_v4 = vpop.f32.mrb[5].mxu1  ;;  %v3070_v5 = vpop.f32.mrb[9].mxu0  ;;  %v3319_v59 = vld [vmem:[%s4153_s8 + $0x20] sm:$0xff]   ;;  %v3320_v60 = vld [vmem:[%s4153_s8 + $0x28] sm:$0xff]   ;;  %v3735_v61 = vsel %vm927_vm9, 1.0, %v3423_v1 }
 0x1da   : > { %v720_v6 = vpop.f32.mrb[6].mxu1  ;;  %v797_v7 = vpop.f32.mrb[10].mxu0  ;;  %v2788_v63 = vld [vmem:[%s4147_s2 + $0x12] ss:$0 sm:$0xff] }
 0x1db   : > { %v724_v8 = vadd.f32 %v723_v62, %v718_v2  ;;  %v801_v9 = vadd.f32 %v800_v0, %v795_v3  ;;  %v3059_v10 = vpop.f32.mrb[7].mxu1  ;;  %v3071_v11 = vpop.f32.mrb[11].mxu0  ;;  %v3738_v62 = vsel %vm933_vm10, 1.0, %v3423_v1  ;;  %v3744_v2 = vmul.f32 0.25, %v3735_v61 }
 0x1dc   : > { %v3747_v3 = vmul.f32 0.25, %v3738_v62 }
 0x1dd   : > { %725 = vst.msk [vmem:[#allocation2 + $0x2] sm:$0x1] %vm570_vm5, %v724_v8  ;;  %802 = vst.msk [vmem:[#allocation2 + $0x3] sm:$0x1] %vm570_vm5, %v801_v9 }
 0x1f8   : > { %v912_v13 = vpop.f32.mrb[8].mxu1 }
 0x1f9   : > { %v913_v14 = vadd.f32 %v912_v13, %v829_v12  ;;  %v3090_v15 = vpop.f32.mrb[9].mxu1 }
 0x1fa   : > { %v915_v16 = vpop.f32.mrb[10].mxu1  ;;  %v2796_v15 = vld [vmem:[%s4147_s2 + $0x13] ss:$0 sm:$0xff] }
 0x1fb   : > { %918 = vst.msk [vmem:[#allocation2 + $0x4] sm:$0xff] %vm445_vm1, %v913_v14  ;;  %v3091_v17 = vpop.f32.mrb[11].mxu1 }
 0x202   : > { %v3676_v18 = vld [vmem:[#allocation2 + $0x8] sm:$0xf]  ;;  %v3678_v19 = vld [vmem:[#allocation2] sm:$0xff] }
 0x203   : > { %v951_v20 = vsel %vm950_vm6, %v3676_v18, 0.0  ;;  %v947_v21 = vsel %vm445_vm1, %v3678_v19, 0.0  ;;  %v957_v22 = vmul.f32 %v3678_v19, %v3678_v19  ;;  %v958_v24 = vmul.f32 %v3676_v18, %v3676_v18 }
 0x204   : > { %952 = vadd.xlane.f32.xlu1 %v951_v20  ;;  %948 = vadd.xlane.f32.xlu0 %v947_v21 }
 0x205   : > { %v959_v23 = vsel %vm445_vm1, %v957_v22, 0.0  ;;  %v962_v25 = vsel %vm950_vm6, %v958_v24, 0.0 }
 0x208   : > { %960 = vadd.xlane.f32.xlu1 %v959_v23 }
 0x20c   : > { %963 = vadd.xlane.f32.xlu1 %v962_v25  ;;  %v2804_v25 = vld [vmem:[%s4147_s2 + $0x14] ss:$0 sm:$0xff] }
 0x291   : > { %v953_v28 = vpop.xlane.xlu1 %952  ;;  %v949_v29 = vpop.xlane.xlu0 %948 }
 0x292   : > { %v955_v30 = vmul.f32 0.03125, %v949_v29  ;;  %v956_v32 = vmul.f32 0.03125, %v953_v28 }
 0x294   : > { %v967_v33 = vmul.f32 %v955_v30, %v955_v30  ;;  %v968_v38 = vmul.f32 %v956_v32, %v956_v32  ;;  %v971_v44 = vsub.f32 %v3678_v19, %v955_v30  ;;  %v972_v48 = vsub.f32 %v3676_v18, %v956_v32 }
 0x295   : > { %v961_v31 = vpop.xlane.xlu1 %960 }
 0x296   : > { %v965_v34 = vmul.f32 0.03125, %v961_v31 }
 0x298   : > { %v969_v35 = vsub.f32 %v965_v34, %v967_v33 }
 0x299   : > { %v964_v36 = vpop.xlane.xlu1 %963 }
 0x29a   : > { %v973_v40 = vadd.f32 1e-05, %v969_v35  ;;  %v966_v41 = vmul.f32 0.03125, %v964_v36 }
 0x29c   : > { %3355 = vrsqrt.f32 %v973_v40  ;;  %v970_v42 = vsub.f32 %v966_v41, %v968_v38 }
 0x29e   : > { %v974_v43 = vadd.f32 1e-05, %v970_v42 }
 0x2a0   : > { %3357 = vrsqrt.f32 %v974_v43 }
 0x2a6   : > { %v3356_v45 = vpop.eup %3355 }
 0x2a7   : > { %v977_v46 = vmul.f32 %v3356_v45, %v971_v44  ;;  %v3781_v44 = vshrl.u32 %v804_v37, 7 }
 0x2a9   : > { %v983_v51 = vmul.f32 %v2786_v47, %v977_v46  ;;  %vm924_vm12 = vcmp.le.s32.totalorder %v3634_v39, %v3781_v44 }
 0x2aa   : > { %v3358_v49 = vpop.eup %3357 }
 0x2ab   : > { %v978_v50 = vmul.f32 %v3358_v49, %v972_v48  ;;  %v989_v54 = vadd.f32 %v2787_v52, %v983_v51 }
 0x2ad   : > { %v984_v53 = vmul.f32 %v2786_v47, %v978_v50  ;;  %v3784_v47 = vadd.s32 8, %v3781_v44 }
 0x2af   : > { %v990_v55 = vadd.f32 %v2787_v52, %v984_v53  ;;  %vm925_vm14 = vcmp.le.s32.totalorder %v3634_v39, %v3784_v47 }
 0x2b1   : > { %v991_v57 = vpack.c.bf16 %v990_v55, %v989_v54 }
 0x2b3   : > { %3097 = vmatmul.mubr.msk.bf16.vlgmr.msra.gmra.mrb[12].mxu0 %vm445_vm1, %v991_v57 }
 0x2b4   : > { %3101 = vmatpush3.bf16.msra.mxu0 %v3317_v56  ;;  %3104 = vmatprep.mubr.msk.bf16.mxu0 %vm3424_vm0, %v3423_v1 }
 0x2b5   : > { %3102 = vmatprep.subr.bf16.mxu0 %v3423_v1 }
 0x2b8   : > { %3103 = vmatpush3.bf16.msra.mxu0 %v3318_v58 }
 0x2b9   : > { %3108 = vmatprep.subr.bf16.mxu0 %v3423_v1 }
 0x2bb   : > { %3105 = vmatmul.mubr.msk.bf16.vlgmr.msra.gmra.mrb[16].mxu0 %vm445_vm1, %v991_v57 }
 0x2bc   : > { %3109 = vmatpush3.bf16.msra.mxu0 %v3319_v59  ;;  %3112 = vmatprep.mubr.msk.bf16.mxu0 %vm3424_vm0, %v3423_v1 }
 0x2bd   : > { %3110 = vmatprep.subr.bf16.mxu0 %v3423_v1 }
 0x2c0   : > { %3111 = vmatpush3.bf16.msra.mxu0 %v3320_v60 }
 0x2c1   : > { %3116 = vmatprep.subr.bf16.mxu0 %v3423_v1 }
 0x2c3   : > { %3113 = vmatmul.mubr.msk.bf16.vlgmr.msra.gmra.mrb[20].mxu0 %vm445_vm1, %v991_v57 }
 0x2c4   : > { %3118 = vmatprep.mubr.msk.bf16.mxu0 %vm3424_vm0, %v3423_v1 }
 0x386   : > { %v1049_v0 = vpop.f32.mrb[12].mxu0 }
 0x387   : > { %v1050_v4 = vadd.f32 %v2788_v63, %v1049_v0  ;;  %v3098_v5 = vpop.f32.mrb[13].mxu0 }
 0x388   : > { %v1052_v6 = vpop.f32.mrb[14].mxu0 }
 0x389   : > { %v1053_v7 = vadd.f32 %v2788_v63, %v1052_v6  ;;  %v3099_v8 = vpop.f32.mrb[15].mxu0  ;;  %v1181_v9 = vmul.f32 %v1050_v4, %v3744_v2  ;;  %v1261_v10 = vmul.f32 %v1050_v4, %v3747_v3 }
 0x38b   : > { %v1182_v11 = vmul.f32 %v1053_v7, %v3744_v2  ;;  %v1262_v12 = vmul.f32 %v1053_v7, %v3747_v3 }
 0x38d   : > { %v1183_v13 = vpack.c.bf16 %v1182_v11, %v1181_v9  ;;  %v1263_v14 = vpack.c.bf16 %v1262_v12, %v1261_v10 }
 0x38e   : > { %v1111_v16 = vpop.f32.mrb[16].mxu0 }
 0x38f   : > { %v3106_v17 = vpop.f32.mrb[17].mxu0  ;;  %v1112_v21 = vadd.f32 %v2796_v15, %v1111_v16 }
 0x390   : > { %v1114_v20 = vpop.f32.mrb[18].mxu0 }
 0x391   : > { %v1115_v22 = vadd.f32 %v2796_v15, %v1114_v20  ;;  %v3107_v23 = vpop.f32.mrb[19].mxu0 }
 0x393   : > { %v1180_v24 = vpack.c.bf16 %v1115_v22, %v1112_v21  ;;  %v3321_v22 = vld [vmem:[%s4153_s8 + $0x30] sm:$0xff]  }
 0x394   : > { %3141 = vmatpush3.bf16.msra.mxu1 %v3321_v22 }
 0x395   : > { %v1188_v26 = vsel %vm445_vm1, %v1180_v24, 0  ;;  %3142 = vmatprep.subr.bf16.mxu1 %v3423_v1 }
 0x396   : > { %v1173_v27 = vpop.f32.mrb[20].mxu0  ;;  %3117 = vmatpush3.bf16.xpose.msra.mxu0 %v1188_v26 }
 0x397   : > { %v1174_v28 = vadd.f32 %v2804_v25, %v1173_v27  ;;  %v3114_v29 = vpop.f32.mrb[21].mxu0  ;;  %3122 = vmatprep.subr.bf16.mxu0 %v3423_v1 }
 0x398   : > { %v1176_v30 = vpop.f32.mrb[22].mxu0 }
 0x399   : > { %v1177_v31 = vadd.f32 %v2804_v25, %v1176_v30  ;;  %v3115_v32 = vpop.f32.mrb[23].mxu0  ;;  %v3762_v33 = vmul.f32 %v3735_v61, %v1174_v28  ;;  %v1332_v34 = vmul.f32 %v3738_v62, %v1174_v28 }
 0x39b   : > { %v3766_v35 = vmul.f32 %v3735_v61, %v1177_v31  ;;  %v1333_v36 = vmul.f32 %v3738_v62, %v1177_v31 }
 0x39d   : > { %v1259_v38 = vpack.c.bf16 %v3766_v35, %v3762_v33  ;;  %v1334_v40 = vpack.c.bf16 %v1333_v36, %v1332_v34  ;;  %3119 = vmatmul.mubr.msk.bf16.vlgmr.msra.gmra.mrb[24].mxu0 %vm445_vm1, %v1183_v13  ;;  %v3322_v33 = vld [vmem:[%s4153_s8 + $0x38] sm:$0xff]  }
 0x39e   : > { %3123 = vmatpush3.bf16.xpose.msra.mxu0 %v1188_v26  ;;  %3124 = vmatprep.mubr.msk.bf16.mxu0 %vm3424_vm0, %v3423_v1 }
 0x39f   : > { %3128 = vmatprep.subr.bf16.mxu0 %v3423_v1  ;;  %v1341_v41 = vsel %vm1339_vm11, %v1334_v40, 0  ;;  %v1388_v32 = vsel %vm1339_vm11, %v1259_v38, 0  ;;  %3143 = vmatpush3.bf16.msra.mxu1 %v3322_v33  ;;  %v3331_v33 = vld [vmem:[%s4156_s11 + $0x30] sm:$0xff]  }
 0x3a0   : > { %3148 = vmatprep.subr.bf16.mxu1 %v3423_v1 }
 0x3a5   : > { %3125 = vmatmul.mubr.msk.bf16.vlgmr.msra.gmra.mrb[28].mxu0 %vm445_vm1, %v1263_v14 }
 0x3a6   : > { %3129 = vmatpush3.bf16.msra.mxu0 %v1341_v41  ;;  %3130 = vmatprep.mubr.msk.bf16.mxu0 %vm3424_vm0, %v3423_v1 }
 0x3a7   : > { %3134 = vmatprep.subr.bf16.mxu0 %v3423_v1 }
 0x470   : > { %v1224_v42 = vpop.f32.mrb[24].mxu0 }
 0x471   : > { %v3120_v43 = vpop.f32.mrb[25].mxu0  ;;  %v1231_v55 = vsel %vm924_vm12, %v1224_v42, -1e+30 }
 0x472   : > { %v1227_v45 = vpop.f32.mrb[26].mxu0  ;;  %v1234_v56 = vsel %vm1233_vm13, %v1231_v55, -inf }
 0x473   : > { %v3121_v46 = vpop.f32.mrb[27].mxu0  ;;  %v1232_v57 = vsel %vm925_vm14, %v1227_v45, -1e+30 }
 0x474   : > { %v1238_v58 = vsel %vm1237_vm15, %v1232_v57, -inf }
 0x478   : > { %v1301_v48 = vpop.f32.mrb[28].mxu0 }
 0x479   : > { %v1308_v49 = vsel %vm924_vm12, %v1301_v48, -1e+30  ;;  %v3126_v50 = vpop.f32.mrb[29].mxu0  ;;  %v2819_v48 = vld [vmem:[%s4147_s2 + $0x15] ss:$0 sm:$0xff] }
 0x47a   : > { %v1304_v37 = vpop.f32.mrb[30].mxu0  ;;  %v1310_v51 = vsel %vm1233_vm13, %v1308_v49, -inf }
 0x47b   : > { %v1309_v52 = vsel %vm925_vm14, %v1304_v37, -1e+30  ;;  %1311 = vmax.xlane.f32.xlu1 %v1310_v51  ;;  %v3127_v53 = vpop.f32.mrb[31].mxu0 }
 0x47c   : > { %v1313_v54 = vsel %vm1237_vm15, %v1309_v52, -inf }
 0x47f   : > { %1314 = vmax.xlane.f32.xlu1 %v1313_v54 }
 0x483   : > { %1235 = vmax.xlane.f32.xlu1 %v1234_v56 }
 0x487   : > { %1239 = vmax.xlane.f32.xlu1 %v1238_v58 }
 0x508   : > { %v1312_v59 = vpop.xlane.xlu1 %1311 }
 0x509   : > { %v1316_v60 = vsub.f32 %v1308_v49, %v1312_v59 }
 0x50b   : > { %v1318_v63 = vmul.f32 1.442695, %v1316_v60  ;;  %v3323_v60 = vld [vmem:[%s4154_s9] sm:$0xff]  }
 0x50c   : > { %v1315_v0 = vpop.xlane.xlu1 %1314 }
 0x50d   : > { %3359 = vpow2.f32 %v1318_v63  ;;  %v1317_v4 = vsub.f32 %v1309_v52, %v1315_v0  ;;  %v3324_v63 = vld [vmem:[%s4154_s9 + $0x8] sm:$0xff]  }
 0x50f   : > { %v1320_v5 = vmul.f32 1.442695, %v1317_v4 }
 0x510   : > { %v1236_v6 = vpop.xlane.xlu1 %1235 }
 0x511   : > { %3361 = vpow2.f32 %v1320_v5  ;;  %v1241_v7 = vsub.f32 %v1231_v55, %v1236_v6 }
 0x513   : > { %v1243_v8 = vmul.f32 1.442695, %v1241_v7 }
 0x514   : > { %v1240_v9 = vpop.xlane.xlu1 %1239 }
 0x515   : > { %3363 = vpow2.f32 %v1243_v8  ;;  %v1242_v10 = vsub.f32 %v1232_v57, %v1240_v9 }
 0x517   : > { %v3360_v11 = vpop.eup %3359  ;;  %v1245_v12 = vmul.f32 1.442695, %v1242_v10 }
 0x518   : > { %v1322_v13 = vsel %vm1233_vm13, %v3360_v11, 0.0 }
 0x519   : > { %3365 = vpow2.f32 %v1245_v12  ;;  %1323 = vadd.xlane.f32.xlu1 %v1322_v13 }
 0x51b   : > { %v3362_v14 = vpop.eup %3361 }
 0x51c   : > { %v1325_v15 = vsel %vm1237_vm15, %v3362_v14, 0.0 }
 0x51d   : > { %1326 = vadd.xlane.f32.xlu1 %v1325_v15 }
 0x51f   : > { %v3364_v16 = vpop.eup %3363 }
 0x520   : > { %v1247_v17 = vsel %vm1233_vm13, %v3364_v16, 0.0 }
 0x521   : > { %1248 = vadd.xlane.f32.xlu0 %v1247_v17 }
 0x523   : > { %v3366_v20 = vpop.eup %3365 }
 0x524   : > { %v1250_v21 = vsel %vm1237_vm15, %v3366_v20, 0.0 }
 0x525   : > { %1251 = vadd.xlane.f32.xlu1 %v1250_v21  ;;  %v2820_v21 = vld [vmem:[%s4147_s2 + $0x16] ss:$0 sm:$0xff] }
 0x5a6   : > { %v1324_v23 = vpop.xlane.xlu1 %1323 }
 0x5a7   : > { %3367 = vrcp.f32 %v1324_v23 }
 0x5aa   : > { %v1327_v24 = vpop.xlane.xlu1 %1326 }
 0x5ab   : > { %3369 = vrcp.f32 %v1327_v24 }
 0x5ae   : > { %v1249_v25 = vpop.xlane.xlu0 %1248 }
 0x5b1   : > { %v3368_v27 = vpop.eup %3367 }
 0x5b2   : > { %v1252_v26 = vpop.xlane.xlu1 %1251  ;;  %v1330_v29 = vmul.f32 %v3368_v27, %v3360_v11  ;;  %v2821_v27 = vld [vmem:[%s4147_s2 + $0x17] ss:$0 sm:$0xff] }
 0x5b3   : > { %3371 = vrcp.f32 %v1252_v26 }
 0x5b4   : > { %3373 = vrcp.f32 %v1249_v25 }
 0x5b5   : > { %v3370_v28 = vpop.eup %3369 }
 0x5b6   : > { %v1331_v30 = vmul.f32 %v3370_v28, %v3362_v14 }
 0x5b8   : > { %v1335_v31 = vpack.c.bf16 %v1331_v30, %v1330_v29 }
 0x5ba   : > { %3131 = vmatmul.mubr.msk.bf16.vlgmr.msra.gmra.mrb[32].mxu0 %vm1233_vm13, %v1335_v31 }
 0x5bb   : > { %3135 = vmatpush3.bf16.msra.mxu0 %v1388_v32  ;;  %3136 = vmatprep.mubr.msk.bf16.mxu0 %vm3424_vm0, %v3423_v1  ;;  %v3325_v32 = vld [vmem:[%s4156_s11] sm:$0xff]  }
 0x5bc   : > { %3156 = vmatprep.subr.bf16.mxu0 %v3423_v1 }
 0x5bd   : > { %v3372_v34 = vpop.eup %3371 }
 0x5be   : > { %v3374_v36 = vpop.eup %3373  ;;  %v1256_v40 = vmul.f32 %v3372_v34, %v3366_v20  ;;  %v3326_v34 = vld [vmem:[%s4156_s11 + $0x8] sm:$0xff]  }
 0x5bf   : > { %v1255_v41 = vmul.f32 %v3374_v36, %v3364_v16  ;;  %v3327_v36 = vld [vmem:[%s4156_s11 + $0x10] sm:$0xff]  }
 0x5c1   : > { %v1260_v42 = vpack.c.bf16 %v1256_v40, %v1255_v41  ;;  %v3328_v40 = vld [vmem:[%s4156_s11 + $0x18] sm:$0xff]   ;;  %v3329_v41 = vld [vmem:[%s4156_s11 + $0x20] sm:$0xff]  }
 0x5c6   : > { %3137 = vmatmul.mubr.msk.bf16.vlgmr.msra.gmra.mrb[32].mxu0 %vm1233_vm13, %v1260_v42  ;;  %v3330_v42 = vld [vmem:[%s4156_s11 + $0x28] sm:$0xff]  }
 0x5c7   : > { %3172 = vmatprep.mubr.msk.bf16.mxu0 %vm3424_vm0, %v3423_v1  ;;  %3157 = vmatpush3.bf16.msra.mxu0 %v3325_v32 }
 0x5c8   : > { %3158 = vmatprep.subr.bf16.mxu0 %v3423_v1 }
 0x5cb   : > { %3159 = vmatpush3.bf16.msra.mxu0 %v3326_v34 }
 0x5cc   : > { %3160 = vmatprep.subr.bf16.mxu0 %v3423_v1 }
 0x5cf   : > { %3161 = vmatpush3.bf16.msra.mxu0 %v3327_v36 }
 0x5d0   : > { %3162 = vmatprep.subr.bf16.mxu0 %v3423_v1 }
 0x5d3   : > { %3163 = vmatpush3.bf16.msra.mxu0 %v3328_v40 }
 0x5d4   : > { %3164 = vmatprep.subr.bf16.mxu0 %v3423_v1 }
 0x5d7   : > { %3165 = vmatpush3.bf16.msra.mxu0 %v3329_v41 }
 0x5d8   : > { %3166 = vmatprep.subr.bf16.mxu0 %v3423_v1 }
 0x5db   : > { %3167 = vmatpush3.bf16.msra.mxu0 %v3330_v42 }
 0x5dc   : > { %3168 = vmatprep.subr.bf16.mxu0 %v3423_v1 }
 0x5df   : > { %3169 = vmatpush3.bf16.msra.mxu0 %v3331_v33 }
 0x5e0   : > { %3170 = vmatprep.subr.bf16.mxu0 %v3423_v1 }
 0x699   : > { %v1424_v35 = vpop.f32.mrb[32].mxu0 }
 0x69a   : > { %v3138_v38 = vpop.f32.mrb[33].mxu0 }
 0x69b   : > { %v1427_v43 = vpop.f32.mrb[34].mxu0  ;;  %v2822_v38 = vld [vmem:[%s4155_s10] ss:$0 sm:$0xff] }
 0x69c   : > { %v1431_v45 = vpack.c.bf16 %v1427_v43, %v1424_v35  ;;  %v3139_v46 = vpop.f32.mrb[35].mxu0  ;;  %v3332_v35 = vld [vmem:[%s4156_s11 + $0x38] sm:$0xff]  }
 0x69d   : > { %3171 = vmatpush3.bf16.msra.mxu0 %v3332_v35 }
 0x69e   : > { %3145 = vmatmul.mubr.msk.bf16.vlgmr.msra.gmra.mrb[12].mxu1 %vm445_vm1, %v1431_v45  ;;  %3206 = vmatprep.subr.bf16.mxu0 %v3423_v1 }
 0x69f   : > { %3152 = vmatprep.mubr.msk.bf16.mxu1 %vm3424_vm0, %v3423_v1  ;;  %3149 = vmatpush3.bf16.msra.mxu1 %v3323_v60 }
 0x6a0   : > { %3150 = vmatprep.subr.bf16.mxu1 %v3423_v1 }
 0x6a3   : > { %3151 = vmatpush3.bf16.msra.mxu1 %v3324_v63 }
 0x6a4   : > { %3176 = vmatprep.subr.bf16.mxu1 %v3423_v1 }
 0x771   : > { %v1486_v49 = vpop.f32.mrb[12].mxu1 }
 0x772   : > { %v1493_v50 = vadd.f32 %v1486_v49, %v3678_v19  ;;  %v3146_v37 = vpop.f32.mrb[13].mxu1 }
 0x773   : > { %v1489_v51 = vpop.f32.mrb[14].mxu1 }
 0x774   : > { %v3836_v52 = vadd.f32 %v2819_v48, %v1493_v50  ;;  %v1494_v53 = vadd.f32 %v1489_v51, %v3676_v18  ;;  %v3147_v54 = vpop.f32.mrb[15].mxu1 }
 0x776   : > { %v3839_v55 = vadd.f32 %v2819_v48, %v1494_v53  ;;  %v1501_v56 = vsel %vm445_vm1, %v3836_v52, 0.0  ;;  %v1509_v57 = vmul.f32 %v3836_v52, %v3836_v52 }
 0x777   : > { %1502 = vadd.xlane.f32.xlu0 %v1501_v56 }
 0x778   : > { %v1504_v58 = vsel %vm950_vm6, %v3839_v55, 0.0  ;;  %v1510_v19 = vmul.f32 %v3839_v55, %v3839_v55  ;;  %v1511_v59 = vsel %vm445_vm1, %v1509_v57, 0.0 }
 0x779   : > { %1505 = vadd.xlane.f32.xlu1 %v1504_v58 }
 0x77a   : > { %v1514_v18 = vsel %vm950_vm6, %v1510_v19, 0.0 }
 0x77b   : > { %1512 = vadd.xlane.f32.xlu0 %v1511_v59 }
 0x77d   : > { %1515 = vadd.xlane.f32.xlu1 %v1514_v18 }
 0x804   : > { %v1503_v0 = vpop.xlane.xlu0 %1502 }
 0x805   : > { %v1507_v4 = vmul.f32 0.03125, %v1503_v0 }
 0x806   : > { %v1506_v5 = vpop.xlane.xlu1 %1505 }
 0x807   : > { %v1508_v6 = vmul.f32 0.03125, %v1506_v5  ;;  %v1519_v8 = vmul.f32 %v1507_v4, %v1507_v4  ;;  %v1523_v17 = vsub.f32 %v3836_v52, %v1507_v4 }
 0x808   : > { %v1513_v7 = vpop.xlane.xlu0 %1512 }
 0x809   : > { %v1517_v9 = vmul.f32 0.03125, %v1513_v7  ;;  %v1520_v11 = vmul.f32 %v1508_v6, %v1508_v6  ;;  %v1524_v22 = vsub.f32 %v3839_v55, %v1508_v6 }
 0x80a   : > { %v1516_v10 = vpop.xlane.xlu1 %1515 }
 0x80b   : > { %v1521_v12 = vsub.f32 %v1517_v9, %v1519_v8  ;;  %v1518_v13 = vmul.f32 0.03125, %v1516_v10  ;;  %v2834_v10 = vld [vmem:[%s4147_s2 + $0x18] ss:$0 sm:$0xff] }
 0x80d   : > { %v1525_v14 = vadd.f32 1e-05, %v1521_v12  ;;  %v1522_v15 = vsub.f32 %v1518_v13, %v1520_v11 }
 0x80f   : > { %3375 = vrsqrt.f32 %v1525_v14  ;;  %v1526_v16 = vadd.f32 1e-05, %v1522_v15 }
 0x811   : > { %3377 = vrsqrt.f32 %v1526_v16 }
 0x819   : > { %v3376_v20 = vpop.eup %3375 }
 0x81a   : > { %v1529_v23 = vmul.f32 %v3376_v20, %v1523_v17 }
 0x81b   : > { %v3378_v24 = vpop.eup %3377 }
 0x81c   : > { %v1530_v25 = vmul.f32 %v3378_v24, %v1524_v22  ;;  %v1535_v26 = vmul.f32 %v2820_v21, %v1529_v23 }
 0x81e   : > { %v1536_v28 = vmul.f32 %v2820_v21, %v1530_v25  ;;  %v1541_v29 = vadd.f32 %v2821_v27, %v1535_v26  ;;  %v3333_v25 = vld [vmem:[%s4153_s8 + $0x40] sm:$0xff]   ;;  %v3334_v26 = vld [vmem:[%s4153_s8 + $0x48] sm:$0xff]  }
 0x820   : > { %v1542_v30 = vadd.f32 %v2821_v27, %v1536_v28 }
 0x822   : > { %v1543_v31 = vpack.c.bf16 %v1542_v30, %v1541_v29 }
 0x824   : > { %3153 = vmatmul.mubr.msk.bf16.vlgmr.msra.gmra.mrb[16].mxu1 %vm445_vm1, %v1543_v31 }
 0x825   : > { %3180 = vmatprep.mubr.msk.bf16.mxu1 %vm3424_vm0, %v3423_v1  ;;  %3177 = vmatpush3.bf16.msra.mxu1 %v3333_v25  ;;  %v2857_v25 = vld [vmem:[%s4147_s2 + $0x1d] ss:$0 sm:$0xff] }
 0x826   : > { %3178 = vmatprep.subr.bf16.mxu1 %v3423_v1 }
 0x829   : > { %3179 = vmatpush3.bf16.msra.mxu1 %v3334_v26 }
 0x82a   : > { %3184 = vmatprep.subr.bf16.mxu1 %v3423_v1 }
 0x8f7   : > { %v1604_v43 = vpop.f32.mrb[16].mxu1 }
 0x8f8   : > { %v1605_v45 = vadd.f32 %v2822_v38, %v1604_v43  ;;  %v3154_v46 = vpop.f32.mrb[17].mxu1 }
 0x8f9   : > { %v1607_v48 = vpop.f32.mrb[18].mxu1  ;;  %v2835_v46 = vld [vmem:[%s4147_s2 + $0x19] ss:$0 sm:$0xff] }
 0x8fa   : > { %v1611_v49 = vmul.f32 %v1605_v45, %v1605_v45  ;;  %v1608_v50 = vadd.f32 %v2822_v38, %v1607_v48  ;;  %v3155_v37 = vpop.f32.mrb[19].mxu1 }
 0x8fc   : > { %v1613_v51 = vmul.f32 %v1611_v49, %v1605_v45  ;;  %v1612_v53 = vmul.f32 %v1608_v50, %v1608_v50 }
 0x8fe   : > { %v1615_v54 = vmul.f32 0.044715, %v1613_v51  ;;  %v1614_v56 = vmul.f32 %v1612_v53, %v1608_v50  ;;  %v2836_v53 = vld [vmem:[%s4147_s2 + $0x1a] ss:$0 sm:$0xff] }
 0x900   : > { %v1617_v57 = vadd.f32 %v1615_v54, %v1605_v45  ;;  %v1616_v58 = vmul.f32 0.044715, %v1614_v56 }
 0x902   : > { %v1619_v19 = vmul.f32 0.7978846, %v1617_v57  ;;  %v1618_v59 = vadd.f32 %v1616_v58, %v1608_v50  ;;  %v3335_v58 = vld [vmem:[%s4153_s8 + $0x50] sm:$0xff]  }
 0x904   : > { %3379 = vtanh.f32 %v1619_v19  ;;  %v1620_v18 = vmul.f32 0.7978846, %v1618_v59  ;;  %v3336_v59 = vld [vmem:[%s4153_s8 + $0x58] sm:$0xff]  }
 0x906   : > { %3381 = vtanh.f32 %v1620_v18  ;;  %v3337_v18 = vld [vmem:[%s4153_s8 + $0x60] sm:$0xff]  }
 0x90e   : > { %v3380_v60 = vpop.eup %3379 }
 0x90f   : > { %v1623_v63 = vadd.f32 1.0, %v3380_v60  ;;  %v3338_v60 = vld [vmem:[%s4153_s8 + $0x68] sm:$0xff]  }
 0x910   : > { %v3382_v0 = vpop.eup %3381 }
 0x911   : > { %v1625_v4 = vmul.f32 0.5, %v1623_v63  ;;  %v1624_v5 = vadd.f32 1.0, %v3382_v0  ;;  %v2841_v63 = vld [vmem:[%s4147_s2 + $0x1b] ss:$0 sm:$0xff] }
 0x913   : > { %v1626_v6 = vmul.f32 0.5, %v1624_v5  ;;  %v1627_v7 = vmul.f32 %v1625_v4, %v1605_v45 }
 0x915   : > { %v1628_v8 = vmul.f32 %v1626_v6, %v1608_v50 }
 0x917   : > { %v1629_v9 = vpack.c.bf16 %v1628_v8, %v1627_v7 }
 0x919   : > { %3173 = vmatmul.mubr.bf16.vlgmr.msra.gmra.mrb[36].mxu0 %v1629_v9 }
 0x91a   : > { %3208 = vmatprep.mubr.msk.bf16.mxu0 %vm3424_vm0, %v3423_v1 }
 0x9ec   : > { %v1728_v11 = vpop.f32.mrb[36].mxu0 }
 0x9ed   : > { %v1735_v12 = vadd.f32 %v1728_v11, %v3836_v52  ;;  %v3174_v13 = vpop.f32.mrb[37].mxu0 }
 0x9ee   : > { %v1731_v14 = vpop.f32.mrb[38].mxu0 }
 0x9ef   : > { %v3911_v15 = vadd.f32 %v2834_v10, %v1735_v12  ;;  %v1736_v16 = vadd.f32 %v1731_v14, %v3839_v55  ;;  %v3175_v17 = vpop.f32.mrb[39].mxu0 }
 0x9f1   : > { %v3914_v20 = vadd.f32 %v2834_v10, %v1736_v16  ;;  %v1752_v21 = vsel %vm445_vm1, %v3911_v15, 0.0  ;;  %v1760_v22 = vmul.f32 %v3911_v15, %v3911_v15  ;;  %v2849_v16 = vld [vmem:[%s4147_s2 + $0x1c] ss:$0 sm:$0xff] }
 0x9f2   : > { %1753 = vadd.xlane.f32.xlu0 %v1752_v21 }
 0x9f3   : > { %v1755_v23 = vsel %vm950_vm6, %v3914_v20, 0.0  ;;  %v1761_v52 = vmul.f32 %v3914_v20, %v3914_v20  ;;  %v1762_v24 = vsel %vm445_vm1, %v1760_v22, 0.0 }
 0x9f4   : > { %1756 = vadd.xlane.f32.xlu1 %v1755_v23 }
 0x9f5   : > { %v1765_v55 = vsel %vm950_vm6, %v1761_v52, 0.0 }
 0x9f6   : > { %1763 = vadd.xlane.f32.xlu0 %v1762_v24 }
 0x9f8   : > { %1766 = vadd.xlane.f32.xlu1 %v1765_v55 }
 0xa7f   : > { %v1754_v27 = vpop.xlane.xlu0 %1753 }
 0xa80   : > { %v1758_v28 = vmul.f32 0.03125, %v1754_v27 }
 0xa81   : > { %v1757_v29 = vpop.xlane.xlu1 %1756 }
 0xa82   : > { %v1759_v30 = vmul.f32 0.03125, %v1757_v29  ;;  %v1770_v32 = vmul.f32 %v1758_v28, %v1758_v28  ;;  %v1774_v43 = vsub.f32 %v3911_v15, %v1758_v28 }
 0xa83   : > { %v1764_v31 = vpop.xlane.xlu0 %1763 }
 0xa84   : > { %v1768_v34 = vmul.f32 0.03125, %v1764_v31  ;;  %v1771_v40 = vmul.f32 %v1759_v30, %v1759_v30  ;;  %v1775_v48 = vsub.f32 %v3914_v20, %v1759_v30 }
 0xa85   : > { %v1767_v36 = vpop.xlane.xlu1 %1766 }
 0xa86   : > { %v1772_v41 = vsub.f32 %v1768_v34, %v1770_v32  ;;  %v1769_v42 = vmul.f32 0.03125, %v1767_v36 }
 0xa88   : > { %v1776_v33 = vadd.f32 1e-05, %v1772_v41  ;;  %v1773_v35 = vsub.f32 %v1769_v42, %v1771_v40 }
 0xa8a   : > { %3383 = vrsqrt.f32 %v1776_v33  ;;  %v1777_v38 = vadd.f32 1e-05, %v1773_v35 }
 0xa8c   : > { %3385 = vrsqrt.f32 %v1777_v38 }
 0xa94   : > { %v3384_v45 = vpop.eup %3383 }
 0xa95   : > { %v1780_v49 = vmul.f32 %v3384_v45, %v1774_v43 }
 0xa96   : > { %v3386_v50 = vpop.eup %3385 }
 0xa97   : > { %v1781_v37 = vmul.f32 %v3386_v50, %v1775_v48  ;;  %v1786_v51 = vmul.f32 %v2835_v46, %v1780_v49 }
 0xa99   : > { %v1787_v54 = vmul.f32 %v2835_v46, %v1781_v37  ;;  %v1792_v56 = vadd.f32 %v2836_v53, %v1786_v51 }
 0xa9b   : > { %v1793_v57 = vadd.f32 %v2836_v53, %v1787_v54 }
 0xa9d   : > { %v1794_v19 = vpack.c.bf16 %v1793_v57, %v1792_v56 }
 0xa9f   : > { %3181 = vmatmul.mubr.msk.bf16.vlgmr.msra.gmra.mrb[20].mxu1 %vm445_vm1, %v1794_v19 }
 0xaa0   : > { %3185 = vmatpush3.bf16.msra.mxu1 %v3335_v58  ;;  %3188 = vmatprep.mubr.msk.bf16.mxu1 %vm3424_vm0, %v3423_v1 }
 0xaa1   : > { %3186 = vmatprep.subr.bf16.mxu1 %v3423_v1 }
 0xaa4   : > { %3187 = vmatpush3.bf16.msra.mxu1 %v3336_v59 }
 0xaa5   : > { %3192 = vmatprep.subr.bf16.mxu1 %v3423_v1 }
 0xaa7   : > { %3189 = vmatmul.mubr.msk.bf16.vlgmr.msra.gmra.mrb[24].mxu1 %vm445_vm1, %v1794_v19 }
 0xaa8   : > { %3193 = vmatpush3.bf16.msra.mxu1 %v3337_v18  ;;  %3196 = vmatprep.mubr.msk.bf16.mxu1 %vm3424_vm0, %v3423_v1 }
 0xaa9   : > { %3194 = vmatprep.subr.bf16.mxu1 %v3423_v1 }
 0xaac   : > { %3195 = vmatpush3.bf16.msra.mxu1 %v3338_v60 }
 0xaad   : > { %3200 = vmatprep.subr.bf16.mxu1 %v3423_v1 }
 0xaaf   : > { %3197 = vmatmul.mubr.msk.bf16.vlgmr.msra.gmra.mrb[28].mxu1 %vm445_vm1, %v1794_v19 }
 0xab0   : > { %3202 = vmatprep.mubr.msk.bf16.mxu1 %vm3424_vm0, %v3423_v1 }
 0xb72   : > { %v1853_v0 = vpop.f32.mrb[20].mxu1 }
 0xb73   : > { %v1854_v4 = vadd.f32 %v2841_v63, %v1853_v0  ;;  %v3182_v5 = vpop.f32.mrb[21].mxu1 }
 0xb74   : > { %v1856_v6 = vpop.f32.mrb[22].mxu1 }
 0xb75   : > { %v1857_v7 = vadd.f32 %v2841_v63, %v1856_v6  ;;  %v3183_v8 = vpop.f32.mrb[23].mxu1  ;;  %v1985_v9 = vmul.f32 %v1854_v4, %v3744_v2  ;;  %v2063_v10 = vmul.f32 %v1854_v4, %v3747_v3 }
 0xb77   : > { %v1986_v11 = vmul.f32 %v1857_v7, %v3744_v2  ;;  %v2064_v12 = vmul.f32 %v1857_v7, %v3747_v3 }
 0xb79   : > { %v1987_v13 = vpack.c.bf16 %v1986_v11, %v1985_v9  ;;  %v2065_v14 = vpack.c.bf16 %v2064_v12, %v2063_v10 }
 0xb7a   : > { %v1915_v17 = vpop.f32.mrb[24].mxu1 }
 0xb7b   : > { %v3190_v21 = vpop.f32.mrb[25].mxu1  ;;  %v1916_v23 = vadd.f32 %v2849_v16, %v1915_v17 }
 0xb7c   : > { %v1918_v22 = vpop.f32.mrb[26].mxu1 }
 0xb7d   : > { %v1919_v52 = vadd.f32 %v2849_v16, %v1918_v22  ;;  %v3191_v24 = vpop.f32.mrb[27].mxu1 }
 0xb7f   : > { %v1984_v55 = vpack.c.bf16 %v1919_v52, %v1916_v23 }
 0xb81   : > { %v1992_v2 = vsel %vm445_vm1, %v1984_v55, 0 }
 0xb82   : > { %v1977_v3 = vpop.f32.mrb[28].mxu1  ;;  %3201 = vmatpush3.bf16.xpose.msra.mxu1 %v1992_v2  ;;  %3207 = vmatpush3.bf16.xpose.msra.mxu0 %v1992_v2 }
 0xb83   : > { %v1978_v26 = vadd.f32 %v2857_v25, %v1977_v3  ;;  %v3198_v27 = vpop.f32.mrb[29].mxu1  ;;  %3212 = vmatprep.subr.bf16.mxu1 %v3423_v1  ;;  %3224 = vmatprep.subr.bf16.mxu0 %v3423_v1 }
 0xb84   : > { %v1980_v28 = vpop.f32.mrb[30].mxu1 }
 0xb85   : > { %v1981_v29 = vadd.f32 %v2857_v25, %v1980_v28  ;;  %v3199_v30 = vpop.f32.mrb[31].mxu1  ;;  %v3984_v31 = vmul.f32 %v3735_v61, %v1978_v26  ;;  %v2134_v32 = vmul.f32 %v3738_v62, %v1978_v26 }
 0xb87   : > { %v3988_v34 = vmul.f32 %v3735_v61, %v1981_v29  ;;  %v2135_v36 = vmul.f32 %v3738_v62, %v1981_v29  ;;  %v3340_v29 = vld [vmem:[%s4153_s8 + $0x78] sm:$0xff]  }
 0xb89   : > { %v2061_v40 = vpack.c.bf16 %v3988_v34, %v3984_v31  ;;  %v2136_v41 = vpack.c.bf16 %v2135_v36, %v2134_v32  ;;  %3203 = vmatmul.mubr.msk.bf16.vlgmr.msra.gmra.mrb[32].mxu1 %vm445_vm1, %v1987_v13  ;;  %3209 = vmatmul.mubr.msk.bf16.vlgmr.msra.gmra.mrb[40].mxu0 %vm445_vm1, %v2065_v14  ;;  %v3339_v13 = vld [vmem:[%s4153_s8 + $0x70] sm:$0xff]  }
 0xb8a   : > { %3214 = vmatprep.mubr.msk.bf16.mxu1 %vm3424_vm0, %v3423_v1  ;;  %3228 = vmatprep.mubr.msk.bf16.mxu0 %vm3424_vm0, %v3423_v1 }
 0xb8b   : > { %v2142_v42 = vsel %vm1339_vm11, %v2136_v41, 0  ;;  %3225 = vmatpush3.bf16.msra.mxu0 %v3339_v13  ;;  %v2189_v25 = vsel %vm1339_vm11, %v2061_v40, 0  ;;  %v2872_v40 = vld [vmem:[%s4147_s2 + $0x1e] ss:$0 sm:$0xff] }
 0xb8c   : > { %3213 = vmatpush3.bf16.msra.mxu1 %v2142_v42  ;;  %3226 = vmatprep.subr.bf16.mxu0 %v3423_v1 }
 0xb8d   : > { %3218 = vmatprep.subr.bf16.mxu1 %v3423_v1 }
 0xb8f   : > { %3227 = vmatpush3.bf16.msra.mxu0 %v3340_v29 }
 0xb90   : > { %3232 = vmatprep.subr.bf16.mxu0 %v3423_v1 }
 0xc5c   : > { %v2028_v61 = vpop.f32.mrb[32].mxu1  ;;  %v2103_v62 = vpop.f32.mrb[40].mxu0 }
 0xc5d   : > { %v2110_v33 = vsel %vm924_vm12, %v2103_v62, -1e+30  ;;  %v3204_v35 = vpop.f32.mrb[33].mxu1  ;;  %v3210_v38 = vpop.f32.mrb[41].mxu0  ;;  %v2035_v48 = vsel %vm924_vm12, %v2028_v61, -1e+30 }
 0xc5e   : > { %v2031_v43 = vpop.f32.mrb[34].mxu1  ;;  %v2106_v45 = vpop.f32.mrb[42].mxu0  ;;  %v2112_v46 = vsel %vm1233_vm13, %v2110_v33, -inf  ;;  %v2037_v54 = vsel %vm1233_vm13, %v2035_v48, -inf }
 0xc5f   : > { %v2111_v49 = vsel %vm925_vm14, %v2106_v45, -1e+30  ;;  %2113 = vmax.xlane.f32.xlu0 %v2112_v46  ;;  %v3205_v50 = vpop.f32.mrb[35].mxu1  ;;  %v3211_v37 = vpop.f32.mrb[43].mxu0  ;;  %v2036_v53 = vsel %vm925_vm14, %v2031_v43, -1e+30 }
 0xc60   : > { %v2115_v51 = vsel %vm1237_vm15, %v2111_v49, -inf  ;;  %v2040_v44 = vsel %vm1237_vm15, %v2036_v53, -inf  ;;  %v3341_v50 = vld [vmem:[%s4154_s9 + $0x10] sm:$0xff]   ;;  %v3342_v37 = vld [vmem:[%s4154_s9 + $0x18] sm:$0xff]  }
 0xc61   : > { %2116 = vmax.xlane.f32.xlu1 %v2115_v51 }
 0xc63   : > { %2038 = vmax.xlane.f32.xlu0 %v2037_v54 }
 0xc65   : > { %2041 = vmax.xlane.f32.xlu1 %v2040_v44 }
 0xcec   : > { %v2114_v56 = vpop.xlane.xlu0 %2113 }
 0xced   : > { %v2118_v57 = vsub.f32 %v2110_v33, %v2114_v56 }
 0xcee   : > { %v2117_v58 = vpop.xlane.xlu1 %2116 }
 0xcef   : > { %v2120_v19 = vmul.f32 1.442695, %v2118_v57  ;;  %v2119_v59 = vsub.f32 %v2111_v49, %v2117_v58 }
 0xcf0   : > { %v2039_v18 = vpop.xlane.xlu0 %2038 }
 0xcf1   : > { %3387 = vpow2.f32 %v2120_v19  ;;  %v2122_v60 = vmul.f32 1.442695, %v2119_v59  ;;  %v2043_v63 = vsub.f32 %v2035_v48, %v2039_v18 }
 0xcf2   : > { %v2042_v0 = vpop.xlane.xlu1 %2041 }
 0xcf3   : > { %3389 = vpow2.f32 %v2122_v60  ;;  %v2045_v39 = vmul.f32 1.442695, %v2043_v63  ;;  %v2044_v47 = vsub.f32 %v2036_v53, %v2042_v0 }
 0xcf5   : > { %3391 = vpow2.f32 %v2045_v39  ;;  %v2047_v4 = vmul.f32 1.442695, %v2044_v47 }
 0xcf7   : > { %3393 = vpow2.f32 %v2047_v4 }
 0xcfb   : > { %v3388_v5 = vpop.eup %3387 }
 0xcfc   : > { %v2124_v6 = vsel %vm1233_vm13, %v3388_v5, 0.0 }
 0xcfd   : > { %v3390_v7 = vpop.eup %3389  ;;  %2125 = vadd.xlane.f32.xlu0 %v2124_v6 }
 0xcfe   : > { %v2127_v8 = vsel %vm1237_vm15, %v3390_v7, 0.0 }
 0xcff   : > { %v3392_v9 = vpop.eup %3391  ;;  %2128 = vadd.xlane.f32.xlu1 %v2127_v8 }
 0xd00   : > { %v2049_v10 = vsel %vm1233_vm13, %v3392_v9, 0.0 }
 0xd01   : > { %v3394_v11 = vpop.eup %3393  ;;  %2050 = vadd.xlane.f32.xlu0 %v2049_v10 }
 0xd02   : > { %v2052_v12 = vsel %vm1237_vm15, %v3394_v11, 0.0 }
 0xd03   : > { %2053 = vadd.xlane.f32.xlu1 %v2052_v12 }
 0xd8a   : > { %v2126_v14 = vpop.xlane.xlu0 %2125 }
 0xd8b   : > { %3395 = vrcp.f32 %v2126_v14 }
 0xd8c   : > { %v2129_v16 = vpop.xlane.xlu1 %2128 }
 0xd8d   : > { %3397 = vrcp.f32 %v2129_v16 }
 0xd8e   : > { %v2051_v21 = vpop.xlane.xlu0 %2050 }
 0xd90   : > { %v2054_v17 = vpop.xlane.xlu1 %2053 }
 0xd91   : > { %3399 = vrcp.f32 %v2054_v17  ;;  %v3343_v17 = vld [vmem:[%s4156_s11 + $0x40] sm:$0xff]  }
 0xd92   : > { %3401 = vrcp.f32 %v2051_v21  ;;  %v3344_v21 = vld [vmem:[%s4156_s11 + $0x48] sm:$0xff]  }
 0xd95   : > { %v3396_v22 = vpop.eup %3395 }
 0xd96   : > { %v2132_v52 = vmul.f32 %v3396_v22, %v3388_v5  ;;  %v2873_v5 = vld [vmem:[%s4147_s2 + $0x1f] ss:$0 sm:$0xff]  ;;  %v3345_v22 = vld [vmem:[%s4156_s11 + $0x50] sm:$0xff]  }
 0xd97   : > { %v3398_v23 = vpop.eup %3397 }
 0xd98   : > { %v2133_v24 = vmul.f32 %v3398_v23, %v3390_v7  ;;  %v3346_v23 = vld [vmem:[%s4156_s11 + $0x58] sm:$0xff]  }
 0xd9a   : > { %v2137_v55 = vpack.c.bf16 %v2133_v24, %v2132_v52  ;;  %v3347_v52 = vld [vmem:[%s4156_s11 + $0x60] sm:$0xff]   ;;  %v3348_v24 = vld [vmem:[%s4156_s11 + $0x68] sm:$0xff]  }
 0xd9b   : > { %v3400_v2 = vpop.eup %3399 }
 0xd9c   : > { %3215 = vmatmul.mubr.msk.bf16.vlgmr.msra.gmra.mrb[36].mxu1 %vm1233_vm13, %v2137_v55  ;;  %v3402_v3 = vpop.eup %3401  ;;  %v2058_v26 = vmul.f32 %v3400_v2, %v3394_v11  ;;  %v2874_v11 = vld [vmem:[%s4147_s2 + $0x20] ss:$0 sm:$0xff]  ;;  %v3349_v55 = vld [vmem:[%s4156_s11 + $0x70] sm:$0xff]   ;;  %v2880_v2 = vld [vmem:[%s4155_s10 + $0x1] ss:$0 sm:$0xff] }
 0xd9d   : > { %3219 = vmatpush3.bf16.msra.mxu1 %v2189_v25  ;;  %3220 = vmatprep.mubr.msk.bf16.mxu1 %vm3424_vm0, %v3423_v1  ;;  %v2057_v27 = vmul.f32 %v3402_v3, %v3392_v9  ;;  %v3350_v25 = vld [vmem:[%s4156_s11 + $0x78] sm:$0xff]  }
 0xd9e   : > { %3240 = vmatprep.subr.bf16.mxu1 %v3423_v1 }
 0xd9f   : > { %v2062_v28 = vpack.c.bf16 %v2058_v26, %v2057_v27 }
 0xda8   : > { %3221 = vmatmul.mubr.msk.bf16.vlgmr.msra.gmra.mrb[36].mxu1 %vm1233_vm13, %v2062_v28 }
 0xda9   : > { %3256 = vmatprep.mubr.msk.bf16.mxu1 %vm3424_vm0, %v3423_v1  ;;  %3241 = vmatpush3.bf16.msra.mxu1 %v3343_v17 }
 0xdaa   : > { %3242 = vmatprep.subr.bf16.mxu1 %v3423_v1 }
 0xdad   : > { %3243 = vmatpush3.bf16.msra.mxu1 %v3344_v21 }
 0xdae   : > { %3244 = vmatprep.subr.bf16.mxu1 %v3423_v1 }
 0xdb1   : > { %3245 = vmatpush3.bf16.msra.mxu1 %v3345_v22 }
 0xdb2   : > { %3246 = vmatprep.subr.bf16.mxu1 %v3423_v1 }
 0xdb5   : > { %3247 = vmatpush3.bf16.msra.mxu1 %v3346_v23  ;;  %v2909_v23 = vld [vmem:[%s4147_s2 + $0x22] ss:$0 sm:$0xff] }
 0xdb6   : > { %3248 = vmatprep.subr.bf16.mxu1 %v3423_v1 }
 0xdb9   : > { %3249 = vmatpush3.bf16.msra.mxu1 %v3347_v52 }
 0xdba   : > { %3250 = vmatprep.subr.bf16.mxu1 %v3423_v1 }
 0xdbd   : > { %3251 = vmatpush3.bf16.msra.mxu1 %v3348_v24 }
 0xdbe   : > { %3252 = vmatprep.subr.bf16.mxu1 %v3423_v1 }
 0xdc1   : > { %3253 = vmatpush3.bf16.msra.mxu1 %v3349_v55 }
 0xdc2   : > { %3254 = vmatprep.subr.bf16.mxu1 %v3423_v1 }
 0xdc5   : > { %3255 = vmatpush3.bf16.msra.mxu1 %v3350_v25 }
 0xe7b   : > { %v2225_v30 = vpop.f32.mrb[36].mxu1 }
 0xe7c   : > { %v3222_v31 = vpop.f32.mrb[37].mxu1 }
 0xe7d   : > { %v2228_v32 = vpop.f32.mrb[38].mxu1 }
 0xe7e   : > { %v2232_v34 = vpack.c.bf16 %v2228_v32, %v2225_v30  ;;  %v3223_v36 = vpop.f32.mrb[39].mxu1 }
 0xe80   : > { %3229 = vmatmul.mubr.msk.bf16.vlgmr.msra.gmra.mrb[44].mxu0 %vm445_vm1, %v2232_v34 }
 0xe81   : > { %3236 = vmatprep.mubr.msk.bf16.mxu0 %vm3424_vm0, %v3423_v1  ;;  %3233 = vmatpush3.bf16.msra.mxu0 %v3341_v50 }
 0xe82   : > { %3234 = vmatprep.subr.bf16.mxu0 %v3423_v1 }
 0xe85   : > { %3235 = vmatpush3.bf16.msra.mxu0 %v3342_v37 }
 0xe86   : > { %3260 = vmatprep.subr.bf16.mxu0 %v3423_v1 }
 0xf53   : > { %v2287_v41 = vpop.f32.mrb[44].mxu0 }
 0xf54   : > { %v2294_v42 = vadd.f32 %v2287_v41, %v3911_v15  ;;  %v3230_v61 = vpop.f32.mrb[45].mxu0 }
 0xf55   : > { %v2290_v62 = vpop.f32.mrb[46].mxu0 }
 0xf56   : > { %v4047_v33 = vadd.f32 %v2872_v40, %v2294_v42  ;;  %v2295_v35 = vadd.f32 %v2290_v62, %v3914_v20  ;;  %v3231_v38 = vpop.f32.mrb[47].mxu0 }
 0xf58   : > { %v4050_v43 = vadd.f32 %v2872_v40, %v2295_v35  ;;  %v2302_v45 = vsel %vm445_vm1, %v4047_v33, 0.0  ;;  %v2310_v46 = vmul.f32 %v4047_v33, %v4047_v33 }
 0xf59   : > { %2303 = vadd.xlane.f32.xlu0 %v2302_v45 }
 0xf5a   : > { %v2305_v48 = vsel %vm950_vm6, %v4050_v43, 0.0  ;;  %v2311_v15 = vmul.f32 %v4050_v43, %v4050_v43  ;;  %v2312_v49 = vsel %vm445_vm1, %v2310_v46, 0.0 }
 0xf5b   : > { %2306 = vadd.xlane.f32.xlu1 %v2305_v48 }
 0xf5c   : > { %v2315_v20 = vsel %vm950_vm6, %v2311_v15, 0.0 }
 0xf5d   : > { %2313 = vadd.xlane.f32.xlu0 %v2312_v49 }
 0xf5f   : > { %2316 = vadd.xlane.f32.xlu1 %v2315_v20 }
 0xfe6   : > { %v2304_v51 = vpop.xlane.xlu0 %2303 }
 0xfe7   : > { %v2308_v53 = vmul.f32 0.03125, %v2304_v51  ;;  %v2908_v51 = vld [vmem:[%s4147_s2 + $0x21] ss:$0 sm:$0xff] }
 0xfe8   : > { %v2307_v54 = vpop.xlane.xlu1 %2306 }
 0xfe9   : > { %v2309_v44 = vmul.f32 0.03125, %v2307_v54  ;;  %v2320_v57 = vmul.f32 %v2308_v53, %v2308_v53  ;;  %v2324_v47 = vsub.f32 %v4047_v33, %v2308_v53 }
 0xfea   : > { %v2314_v56 = vpop.xlane.xlu0 %2313 }
 0xfeb   : > { %v2318_v58 = vmul.f32 0.03125, %v2314_v56  ;;  %v2321_v59 = vmul.f32 %v2309_v44, %v2309_v44  ;;  %v2325_v6 = vsub.f32 %v4050_v43, %v2309_v44 }
 0xfec   : > { %v2317_v19 = vpop.xlane.xlu1 %2316 }
 0xfed   : > { %v2322_v18 = vsub.f32 %v2318_v58, %v2320_v57  ;;  %v2319_v60 = vmul.f32 0.03125, %v2317_v19 }
 0xfef   : > { %v2326_v63 = vadd.f32 1e-05, %v2322_v18  ;;  %v2323_v0 = vsub.f32 %v2319_v60, %v2321_v59 }
 0xff1   : > { %3403 = vrsqrt.f32 %v2326_v63  ;;  %v2327_v39 = vadd.f32 1e-05, %v2323_v0 }
 0xff3   : > { %3405 = vrsqrt.f32 %v2327_v39 }
 0xffb   : > { %v3404_v4 = vpop.eup %3403 }
 0xffc   : > { %v2330_v7 = vmul.f32 %v3404_v4, %v2324_v47  ;;  %v3352_v47 = vld [vmem:[%s4149_s4 + $0x8] sm:$0xff]  }
 0xffd   : > { %v3406_v8 = vpop.eup %3405 }
 0xffe   : > { %v2331_v9 = vmul.f32 %v3406_v8, %v2325_v6  ;;  %v2336_v10 = vmul.f32 %v2873_v5, %v2330_v7 }
0x1000   : > { %v2337_v12 = vmul.f32 %v2873_v5, %v2331_v9  ;;  %v2342_v13 = vadd.f32 %v2874_v11, %v2336_v10 }
0x1002   : > { %v2343_v14 = vadd.f32 %v2874_v11, %v2337_v12 }
0x1004   : > { %v2344_v16 = vpack.c.bf16 %v2343_v14, %v2342_v13 }
0x1006   : > { %3237 = vmatmul.mubr.msk.bf16.vlgmr.msra.gmra.mrb[48].mxu0 %vm445_vm1, %v2344_v16 }
0x1007   : > { %3264 = vmatprep.mubr.msk.bf16.mxu0 %vm3424_vm0, %v3423_v1 }
0x10d9   : > { %v2407_v3 = vpop.f32.mrb[48].mxu0 }
0x10da   : > { %v2408_v26 = vadd.f32 %v2880_v2, %v2407_v3  ;;  %v3238_v27 = vpop.f32.mrb[49].mxu0  ;;  %v2910_v3 = vld [vmem:[%s4147_s2 + $0x23] ss:$0 sm:$0xff] }
0x10db   : > { %v2410_v28 = vpop.f32.mrb[50].mxu0 }
0x10dc   : > { %v2414_v29 = vmul.f32 %v2408_v26, %v2408_v26  ;;  %v2411_v30 = vadd.f32 %v2880_v2, %v2410_v28  ;;  %v3239_v31 = vpop.f32.mrb[51].mxu0 }
0x10de   : > { %v2416_v32 = vmul.f32 %v2414_v29, %v2408_v26  ;;  %v2415_v34 = vmul.f32 %v2411_v30, %v2411_v30 }
0x10e0   : > { %v2418_v36 = vmul.f32 0.044715, %v2416_v32  ;;  %v2417_v40 = vmul.f32 %v2415_v34, %v2411_v30 }
0x10e2   : > { %v2420_v41 = vadd.f32 %v2418_v36, %v2408_v26  ;;  %v2419_v42 = vmul.f32 0.044715, %v2417_v40 }
0x10e4   : > { %v2422_v61 = vmul.f32 0.7978846, %v2420_v41  ;;  %v2421_v62 = vadd.f32 %v2419_v42, %v2411_v30 }
0x10e6   : > { %3407 = vtanh.f32 %v2422_v61  ;;  %v2423_v35 = vmul.f32 0.7978846, %v2421_v62 }
0x10e8   : > { %3409 = vtanh.f32 %v2423_v35 }
0x10f0   : > { %v3408_v38 = vpop.eup %3407 }
0x10f1   : > { %v2426_v45 = vadd.f32 1.0, %v3408_v38 }
0x10f2   : > { %v3410_v46 = vpop.eup %3409 }
0x10f3   : > { %v2428_v48 = vmul.f32 0.5, %v2426_v45  ;;  %v2427_v15 = vadd.f32 1.0, %v3410_v46 }
0x10f5   : > { %v2429_v49 = vmul.f32 0.5, %v2427_v15  ;;  %v2430_v20 = vmul.f32 %v2428_v48, %v2408_v26 }
0x10f7   : > { %v2431_v50 = vmul.f32 %v2429_v49, %v2411_v30 }
0x10f9   : > { %v2432_v37 = vpack.c.bf16 %v2431_v50, %v2430_v20 }
0x10fb   : > { %3257 = vmatmul.mubr.bf16.vlgmr.msra.gmra.mrb[40].mxu1 %v2432_v37 }
0x11ce   : > { %v2532_v53 = vpop.f32.mrb[40].mxu1 }
0x11cf   : > { %v2539_v54 = vadd.f32 %v2532_v53, %v4047_v33  ;;  %v3258_v44 = vpop.f32.mrb[41].mxu1 }
0x11d0   : > { %v2535_v56 = vpop.f32.mrb[42].mxu1 }
0x11d1   : > { %v2545_v57 = vadd.f32 %v2908_v51, %v2539_v54  ;;  %v2540_v58 = vadd.f32 %v2535_v56, %v4050_v43  ;;  %v3259_v19 = vpop.f32.mrb[43].mxu1  ;;  %v3351_v43 = vld [vmem:[%s4149_s4] sm:$0xff]  }
0x11d2   : > { %3261 = vmatpush3.bf16.msra.mxu0 %v3351_v43 }
0x11d3   : > { %v2546_v59 = vadd.f32 %v2908_v51, %v2540_v58  ;;  %v2549_v18 = vsel %vm445_vm1, %v2545_v57, 0.0  ;;  %v2557_v60 = vmul.f32 %v2545_v57, %v2545_v57  ;;  %3262 = vmatprep.subr.bf16.mxu0 %v3423_v1 }
0x11d4   : > { %2550 = vadd.xlane.f32.xlu0 %v2549_v18 }
0x11d5   : > { %v2552_v63 = vsel %vm950_vm6, %v2546_v59, 0.0  ;;  %v2558_v0 = vmul.f32 %v2546_v59, %v2546_v59  ;;  %v2559_v39 = vsel %vm445_vm1, %v2557_v60, 0.0 }
0x11d6   : > { %2553 = vadd.xlane.f32.xlu1 %v2552_v63  ;;  %3263 = vmatpush3.bf16.msra.mxu0 %v3352_v47 }
0x11d7   : > { %v2562_v33 = vsel %vm950_vm6, %v2558_v0, 0.0 }
0x11d8   : > { %2560 = vadd.xlane.f32.xlu0 %v2559_v39 }
0x11da   : > { %2563 = vadd.xlane.f32.xlu1 %v2562_v33 }
0x1261   : > { %v2551_v4 = vpop.xlane.xlu0 %2550 }
0x1262   : > { %v2555_v5 = vmul.f32 0.03125, %v2551_v4 }
0x1263   : > { %v2554_v6 = vpop.xlane.xlu1 %2553 }
0x1264   : > { %v2556_v7 = vmul.f32 0.03125, %v2554_v6  ;;  %v2567_v9 = vmul.f32 %v2555_v5, %v2555_v5  ;;  %v2571_v22 = vsub.f32 %v2545_v57, %v2555_v5 }
0x1265   : > { %v2561_v8 = vpop.xlane.xlu0 %2560 }
0x1266   : > { %v2565_v10 = vmul.f32 0.03125, %v2561_v8  ;;  %v2568_v12 = vmul.f32 %v2556_v7, %v2556_v7  ;;  %v2572_v52 = vsub.f32 %v2546_v59, %v2556_v7 }
0x1267   : > { %v2564_v11 = vpop.xlane.xlu1 %2563 }
0x1268   : > { %v2569_v13 = vsub.f32 %v2565_v10, %v2567_v9  ;;  %v2566_v14 = vmul.f32 0.03125, %v2564_v11 }
0x126a   : > { %v2573_v16 = vadd.f32 1e-05, %v2569_v13  ;;  %v2570_v17 = vsub.f32 %v2566_v14, %v2568_v12 }
0x126c   : > { %3411 = vrsqrt.f32 %v2573_v16  ;;  %v2574_v21 = vadd.f32 1e-05, %v2570_v17 }
0x126e   : > { %3413 = vrsqrt.f32 %v2574_v21 }
0x1276   : > { %v3412_v1 = vpop.eup %3411 }
0x1277   : > { %v2577_v24 = vmul.f32 %v3412_v1, %v2571_v22 }
0x1278   : > { %v3414_v55 = vpop.eup %3413 }
0x1279   : > { %v2583_v25 = vmul.f32 %v2909_v23, %v2577_v24  ;;  %v2578_v2 = vmul.f32 %v3414_v55, %v2572_v52 }
0x127b   : > { %v2584_v26 = vmul.f32 %v2909_v23, %v2578_v2  ;;  %v2589_v27 = vadd.f32 %v2910_v3, %v2583_v25 }
0x127d   : > { %v2590_v28 = vadd.f32 %v2910_v3, %v2584_v26 }
0x127f   : > { %v2591_v29 = vpack.c.bf16 %v2590_v28, %v2589_v27 }
0x1281   : > { %3265 = vmatmul.mubr.msk.bf16.vlgmr.msra.gmra.mrb[52].mxu0 %vm445_vm1, %v2591_v29 }
0x1354   : > { %v2645_v30 = vpop.f32.mrb[52].mxu0 }
0x1355   : > { %2652 = vst [vmem:[%s424_s15] sm:$0xff] %v2645_v30  ;;  %v3266_v31 = vpop.f32.mrb[53].mxu0 }
0x1356   : > { %v2648_v32 = vpop.f32.mrb[54].mxu0 }
0x1357   : > { %2653 = vst [vmem:[%s424_s15 + $0x8] sm:$0xf] %v2648_v32  ;;  %v3267_v34 = vpop.f32.mrb[55].mxu0 }
0x1358 PF: > { %s22_s21 = sadd.s32 1, %s3421_s21  }
0x1359   : > { %p19_p4 = scmp.ge.s32.totalorder %s22_s21, 4  }
0x135b   :  { %21 = sbr.rel (!%p19_p4) target bundleno = 1 (0x1), region = 114 }

</bundles_post_ra>
